<compile_context>
chip_gen: v6e
topology: v6e:2x2x1
jax: 0.10.0
libtpu: 0.0.40
codegen_flags: <defaults>
</compile_context>

<pallas_src>
import functools

import numpy as np
import jax
import jax.numpy as jnp
from jax.experimental import pallas as pl
from jax.experimental.pallas import tpu as pltpu


# ------------------------------ fused Pallas kernel ------------------------------

def fullnet_kernel(x_ref, w1_ref, b1_ref, sel_ref, selT_ref, g_ref, be_ref,
                   w2_ref, b2_ref, f1w_ref, f1b_ref, f2w_ref, f2b_ref,
                   hw1a_ref, hw1b_ref, hb1_ref, hw2_ref, hb2_ref,
                   out_ref, c1_ref, c2_ref, *, n, eps):
    f32 = jnp.float32
    b = 2 * n                      # rows: [0:n] = image1 branch, [n:2n] = image2 branch
    G1 = 256                       # pooled-conv1 lane group (196 real + 60 zero pad lanes)
    G2 = 128                       # pooled-conv2 lane group (exactly 4*4*8)

    # conv1 (padding=2 + im2col + pool-window grouping folded into the Toeplitz weights)
    y1 = jnp.dot(x_ref[...], w1_ref[...], preferred_element_type=f32) + b1_ref[...]
    # max_pool2d(k=2) + relu == max over the 4 window-offset lane groups (128-aligned)
    p1 = jnp.maximum(jnp.maximum(y1[:, 0:G1], y1[:, G1:2 * G1]),
                     jnp.maximum(y1[:, 2 * G1:3 * G1], y1[:, 3 * G1:4 * G1]))
    p1 = jnp.maximum(p1, 0.0)                                             # [B, 256]

    # BatchNorm2d: training-mode batch statistics, computed PER siamese branch.
    # Per-row per-channel sums via a 0/1 selector matmul (channel = lane % 4).
    ch_s = jnp.dot(p1, sel_ref[...], preferred_element_type=f32)          # [B, 4]
    ch_q = jnp.dot(p1 * p1, sel_ref[...], preferred_element_type=f32)     # [B, 4]
    cnt = float(n * 7 * 7)

    def branch_affine(r0, r1):
        m = jnp.sum(ch_s[r0:r1], axis=0, keepdims=True) / cnt             # [1, 4]
        msq = jnp.sum(ch_q[r0:r1], axis=0, keepdims=True) / cnt
        var = msq - m * m                                                 # biased, as PyTorch
        scale = g_ref[...] * jax.lax.rsqrt(var + eps)
        shift = be_ref[...] - m * scale
        # broadcast per-channel scale/shift to the (ph, pw, c) lane layout via 0/1 matmul
        return (jnp.dot(scale, selT_ref[...], preferred_element_type=f32),
                jnp.dot(shift, selT_ref[...], preferred_element_type=f32))  # [1, 256]

    sc1, sh1 = branch_affine(0, n)
    sc2, sh2 = branch_affine(n, b)
    is_b1 = jax.lax.broadcasted_iota(jnp.int32, (b, 1), 0) < n
    z1 = p1 * jnp.where(is_b1, sc1, sc2) + jnp.where(is_b1, sh1, sh2)     # [B, 256]

    # conv2 + max_pool2d(k=2) + relu (same Toeplitz + lane-group-max trick)
    y2 = jnp.dot(z1, w2_ref[...], preferred_element_type=f32) + b2_ref[...]
    p2 = jnp.maximum(jnp.maximum(y2[:, 0:G2], y2[:, G2:2 * G2]),
                     jnp.maximum(y2[:, 2 * G2:3 * G2], y2[:, 3 * G2:4 * G2]))
    p2 = jnp.maximum(p2, 0.0)                                             # [B, 128]

    # subnet MLP: fc2(relu(fc1(.)))  (fc1 rows pre-permuted to match the NHWC lane order)
    h = jnp.maximum(
        jnp.dot(p2, f1w_ref[...], preferred_element_type=f32) + f1b_ref[...], 0.0)
    cls = jnp.dot(h, f2w_ref[...], preferred_element_type=f32) + f2b_ref[...]   # [B, 10]
    c1_ref[...] = cls[0:n]
    c2_ref[...] = cls[n:b]

    # head: softmax both branches, concat via split fc1 weights, relu, fc2
    zc = cls - jnp.max(cls, axis=-1, keepdims=True)
    e = jnp.exp(zc)
    s = e / jnp.sum(e, axis=-1, keepdims=True)
    hh = (jnp.dot(s[0:n], hw1a_ref[...], preferred_element_type=f32)
          + jnp.dot(s[n:b], hw1b_ref[...], preferred_element_type=f32)
          + hb1_ref[...])
    hh = jnp.maximum(hh, 0.0)
    out_ref[...] = jnp.dot(hh, hw2_ref[...], preferred_element_type=f32) + hb2_ref[...]


# ------------------------------ host-side weight packing (once) ------------------------------

def pack_params(params):
    """Fold conv padding, im2col and pool-window grouping into Toeplitz operator matrices,
    permute fc1 rows for the in-kernel NHWC lane order, split the head fc1.  Weights only —
    runs once, outside the hot path."""
    p = params["subnet"]
    f32 = jnp.float32

    # conv1: [B, 14*14] @ W1 -> [B, 4*256] lanes = (window offset dd, ph, pw, cout)
    o = np.arange(4 * 256)
    dd, r = o // 256, o % 256
    lane_ok = r < 196                                   # 196 real lanes + 60 zero pad lanes
    rc = np.minimum(r, 195)
    ph, pw, co = rc // 28, (rc % 28) // 4, rc % 4
    oh, ow = 2 * ph + dd // 2, 2 * pw + dd % 2          # conv1 output position (0..13)
    q = np.arange(196)
    ih, iw = q // 14, q % 14                            # unpadded input pixel
    ti = ih[:, None] - oh[None, :] + 2                  # tap index (padding=2 folded in)
    tj = iw[:, None] - ow[None, :] + 2
    ok = (ti >= 0) & (ti < 4) & (tj >= 0) & (tj < 4) & lane_ok[None, :]
    w1 = p["conv1_w"][:, 0]                             # [4, 4, 4]
    co_b = np.broadcast_to(co[None, :], ok.shape)
    w1_big = (w1[co_b, np.clip(ti, 0, 3), np.clip(tj, 0, 3)]
              * ok.astype(np.float32)).astype(f32)      # [196, 1024]
    b1_tile = (p["conv1_b"][co] * lane_ok.astype(np.float32)).reshape(1, -1).astype(f32)

    # per-channel selector over pooled1 lanes (BN statistics + broadcast back)
    rp = np.arange(256)
    sel_np = ((np.minimum(rp, 195) % 4)[:, None] == np.arange(4)[None, :]) & (rp < 196)[:, None]
    sel = jnp.asarray(sel_np.astype(np.float32))        # [256, 4]
    selT = jnp.asarray(sel_np.T.astype(np.float32))     # [4, 256]

    # conv2: [B, 256] @ W2 -> [B, 4*128] lanes = (dd, ph, pw, cout)
    o2 = np.arange(4 * 128)
    dd2, r2 = o2 // 128, o2 % 128
    ph2, pw2, co2 = r2 // 32, (r2 % 32) // 8, r2 % 8
    oh2, ow2 = 2 * ph2 + dd2 // 2, 2 * pw2 + dd2 % 2    # conv2 output position (0..7)
    q2 = np.arange(256)
    in_ok = q2 < 196
    qc = np.minimum(q2, 195)
    ih2, iw2, ci2 = qc // 28, (qc % 28) // 4, qc % 4    # pooled1 (ph, pw, c) lane layout
    ti2 = ih2[:, None] - oh2[None, :] + 2
    tj2 = iw2[:, None] - ow2[None, :] + 2
    ok2 = (ti2 >= 0) & (ti2 < 4) & (tj2 >= 0) & (tj2 < 4) & in_ok[:, None]
    w2 = p["conv2_w"]                                   # [8, 4, 4, 4]
    w2_big = (w2[np.broadcast_to(co2[None, :], ok2.shape),
                 np.broadcast_to(ci2[:, None], ok2.shape),
                 np.clip(ti2, 0, 3), np.clip(tj2, 0, 3)]
              * ok2.astype(np.float32)).astype(f32)     # [256, 512]
    b2_tile = p["conv2_b"][co2].reshape(1, -1).astype(f32)

    # fc1: permute rows from PyTorch NCHW flatten order (c*16+h*4+w) to our (h, w, c) lanes
    l = np.arange(128)
    h_, w_, c_ = l // 32, (l % 32) // 8, l % 8
    fc1_w = p["fc1_w"][c_ * 16 + h_ * 4 + w_]           # [128, nb_hidden]

    return (w1_big, b1_tile, sel, selT,
            p["bn1_gamma"].reshape(1, -1).astype(f32), p["bn1_beta"].reshape(1, -1).astype(f32),
            w2_big, b2_tile,
            fc1_w.astype(f32), p["fc1_b"].reshape(1, -1).astype(f32),
            p["fc2_w"].astype(f32), p["fc2_b"].reshape(1, -1).astype(f32),
            params["head_fc1_w"][:10].astype(f32), params["head_fc1_w"][10:].astype(f32),
            params["head_fc1_b"].reshape(1, -1).astype(f32),
            params["head_fc2_w"].astype(f32), params["head_fc2_b"].reshape(1, -1).astype(f32))


# ------------------------------ forward wrapper ------------------------------

def fullnet_forward(x, packed):
    """x: [N, 2, 14, 14] -> (out [N,2], classes_1 [N,10], classes_2 [N,10])."""
    n = x.shape[0]
    b = 2 * n
    # stack both siamese branches on the row axis: rows [0:n]=image1, [n:2n]=image2
    xin = jnp.concatenate([x[:, 0].reshape(n, 196), x[:, 1].reshape(n, 196)], axis=0)
    args = (xin,) + tuple(packed)

    flops = (2 * b * (196 * 1024 + 2 * 256 * 4 + 256 * 512 + 128 * 32 + 32 * 10)
             + 2 * n * (2 * 10 * 16 + 16 * 2) + 4 * 2 * 4 * 256)
    nbytes = sum(int(np.prod(a.shape)) * 4 for a in args) + (n * 2 + 2 * n * 10) * 4

    out, c1, c2 = pl.pallas_call(
        functools.partial(fullnet_kernel, n=n, eps=1e-5),
        out_shape=(jax.ShapeDtypeStruct((n, 2), jnp.float32),
                   jax.ShapeDtypeStruct((n, 10), jnp.float32),
                   jax.ShapeDtypeStruct((n, 10), jnp.float32)),
        in_specs=[pl.BlockSpec(memory_space=pltpu.MemorySpace.VMEM)] * len(args),
        out_specs=(pl.BlockSpec(memory_space=pltpu.MemorySpace.VMEM),) * 3,
        compiler_params=pltpu.CompilerParams(vmem_limit_bytes=64 * 1024 * 1024),
        cost_estimate=pl.CostEstimate(flops=int(flops),
                                      transcendentals=int(b * 10 + 8),
                                      bytes_accessed=int(nbytes)),
    )(*args)
    return out, c1, c2


# ------------------------------ deterministic parameter init ------------------------------

def init_params(key, nb_hidden_subnet=32, nb_hidden_full=16):
    keys = jax.random.split(key, 12)

    def u(k, shape, fan_in):
        bound = 1.0 / jnp.sqrt(float(fan_in))
        return jax.random.uniform(k, shape, jnp.float32, -bound, bound)

    subnet = dict(
        conv1_w=u(keys[0], (4, 1, 4, 4), 1 * 4 * 4),
        conv1_b=u(keys[1], (4,), 1 * 4 * 4),
        conv2_w=u(keys[2], (8, 4, 4, 4), 4 * 4 * 4),
        conv2_b=u(keys[3], (8,), 4 * 4 * 4),
        fc1_w=u(keys[4], (8 * 4 * 4, nb_hidden_subnet), 8 * 4 * 4),   # stored [in, out], PyTorch (c,h,w) row order
        fc1_b=u(keys[5], (nb_hidden_subnet,), 8 * 4 * 4),
        fc2_w=u(keys[6], (nb_hidden_subnet, 10), nb_hidden_subnet),
        fc2_b=u(keys[7], (10,), nb_hidden_subnet),
        bn1_gamma=jnp.ones((4,), jnp.float32),
        bn1_beta=jnp.zeros((4,), jnp.float32),
    )
    return dict(
        subnet=subnet,
        head_fc1_w=u(keys[8], (20, nb_hidden_full), 20),
        head_fc1_b=u(keys[9], (nb_hidden_full,), 20),
        head_fc2_w=u(keys[10], (nb_hidden_full, 2), nb_hidden_full),
        head_fc2_b=u(keys[11], (2,), nb_hidden_full),
    )


# ------------------------------ main ------------------------------

if __name__ == "__main__":
    key = jax.random.PRNGKey(0)
    kx, kp = jax.random.split(key)
    x = jax.random.normal(kx, (2, 2, 14, 14), jnp.float32)   # [N, 2 images, 14, 14]
    params = init_params(kp, nb_hidden_subnet=32, nb_hidden_full=16)
    packed = pack_params(params)                              # host-side weight repacking, once

    fwd = jax.jit(lambda xx: fullnet_forward(xx, packed))
    out, classes_1, classes_2 = fwd(x)
    jax.block_until_ready((out, classes_1, classes_2))

    assert out.shape == (2, 2)
    assert classes_1.shape == (2, 10) and classes_2.shape == (2, 10)
    # TODO(synk): BatchNorm running-stat updates are training-time state and are not reproduced.
    print("KERNEL_OK")
</pallas_src>

<mosaic_0001>
module attributes {stable_mosaic.version = 11 : i64} {
  func.func @fullnet_kernel(%arg0: memref<4x196xf32, #tpu.memory_space<vmem>>, %arg1: memref<196x1024xf32, #tpu.memory_space<vmem>>, %arg2: memref<1x1024xf32, #tpu.memory_space<vmem>>, %arg3: memref<256x4xf32, #tpu.memory_space<vmem>>, %arg4: memref<4x256xf32, #tpu.memory_space<vmem>>, %arg5: memref<1x4xf32, #tpu.memory_space<vmem>>, %arg6: memref<1x4xf32, #tpu.memory_space<vmem>>, %arg7: memref<256x512xf32, #tpu.memory_space<vmem>>, %arg8: memref<1x512xf32, #tpu.memory_space<vmem>>, %arg9: memref<128x32xf32, #tpu.memory_space<vmem>>, %arg10: memref<1x32xf32, #tpu.memory_space<vmem>>, %arg11: memref<32x10xf32, #tpu.memory_space<vmem>>, %arg12: memref<1x10xf32, #tpu.memory_space<vmem>>, %arg13: memref<10x16xf32, #tpu.memory_space<vmem>>, %arg14: memref<10x16xf32, #tpu.memory_space<vmem>>, %arg15: memref<1x16xf32, #tpu.memory_space<vmem>>, %arg16: memref<16x2xf32, #tpu.memory_space<vmem>>, %arg17: memref<1x2xf32, #tpu.memory_space<vmem>>, %arg18: memref<2x2xf32, #tpu.memory_space<vmem>>, %arg19: memref<2x10xf32, #tpu.memory_space<vmem>>, %arg20: memref<2x10xf32, #tpu.memory_space<vmem>>) attributes {dimension_semantics = [], scalar_prefetch = 0 : i64, scratch_operands = 0 : i64, tpu.core_type = #tpu.core_type<tc>} {
    %c0 = arith.constant 0 : index
    %c0_0 = arith.constant 0 : index
    %0 = vector.load %arg0[%c0, %c0_0] : memref<4x196xf32, #tpu.memory_space<vmem>>, vector<4x196xf32>
    %c0_1 = arith.constant 0 : index
    %c0_2 = arith.constant 0 : index
    %1 = vector.load %arg1[%c0_1, %c0_2] : memref<196x1024xf32, #tpu.memory_space<vmem>>, vector<196x1024xf32>
    %cst = arith.constant dense<0.000000e+00> : vector<4x1024xf32>
    %2 = tpu.matmul %0, %1, %cst {dimension_numbers = #tpu.dot_dimension_numbers<[1], [0], [0], [1], [0, 0, 1, 1], [], []>} : vector<4x196xf32>, vector<196x1024xf32>, vector<4x1024xf32> -> vector<4x1024xf32>
    %c0_3 = arith.constant 0 : index
    %c0_4 = arith.constant 0 : index
    %3 = vector.load %arg2[%c0_3, %c0_4] : memref<1x1024xf32, #tpu.memory_space<vmem>>, vector<1x1024xf32>
    %4 = vector.broadcast %3 : vector<1x1024xf32> to vector<4x1024xf32>
    %5 = arith.addf %2, %4 : vector<4x1024xf32>
    %6 = vector.extract_strided_slice %5 {offsets = [0, 0], sizes = [4, 256], strides = [1, 1]} : vector<4x1024xf32> to vector<4x256xf32>
    %7 = vector.extract_strided_slice %5 {offsets = [0, 256], sizes = [4, 256], strides = [1, 1]} : vector<4x1024xf32> to vector<4x256xf32>
    %8 = arith.maximumf %6, %7 : vector<4x256xf32>
    %9 = vector.extract_strided_slice %5 {offsets = [0, 512], sizes = [4, 256], strides = [1, 1]} : vector<4x1024xf32> to vector<4x256xf32>
    %10 = vector.extract_strided_slice %5 {offsets = [0, 768], sizes = [4, 256], strides = [1, 1]} : vector<4x1024xf32> to vector<4x256xf32>
    %11 = arith.maximumf %9, %10 : vector<4x256xf32>
    %12 = arith.maximumf %8, %11 : vector<4x256xf32>
    %cst_5 = arith.constant 0.000000e+00 : f32
    %13 = vector.broadcast %cst_5 : f32 to vector<4x256xf32>
    %14 = arith.maximumf %12, %13 : vector<4x256xf32>
    %c0_6 = arith.constant 0 : index
    %c0_7 = arith.constant 0 : index
    %15 = vector.load %arg3[%c0_6, %c0_7] : memref<256x4xf32, #tpu.memory_space<vmem>>, vector<256x4xf32>
    %cst_8 = arith.constant dense<0.000000e+00> : vector<4x4xf32>
    %16 = tpu.matmul %14, %15, %cst_8 {dimension_numbers = #tpu.dot_dimension_numbers<[1], [0], [0], [1], [0, 0, 1, 1], [], []>} : vector<4x256xf32>, vector<256x4xf32>, vector<4x4xf32> -> vector<4x4xf32>
    %17 = arith.mulf %14, %14 : vector<4x256xf32>
    %c0_9 = arith.constant 0 : index
    %c0_10 = arith.constant 0 : index
    %18 = vector.load %arg3[%c0_9, %c0_10] : memref<256x4xf32, #tpu.memory_space<vmem>>, vector<256x4xf32>
    %cst_11 = arith.constant dense<0.000000e+00> : vector<4x4xf32>
    %19 = tpu.matmul %17, %18, %cst_11 {dimension_numbers = #tpu.dot_dimension_numbers<[1], [0], [0], [1], [0, 0, 1, 1], [], []>} : vector<4x256xf32>, vector<256x4xf32>, vector<4x4xf32> -> vector<4x4xf32>
    %20 = vector.extract_strided_slice %16 {offsets = [0, 0], sizes = [2, 4], strides = [1, 1]} : vector<4x4xf32> to vector<2x4xf32>
    %cst_12 = arith.constant dense<0.000000e+00> : vector<4xf32>
    %21 = vector.multi_reduction <add>, %20, %cst_12 [0] : vector<2x4xf32> to vector<4xf32>
    %22 = vector.shape_cast %21 : vector<4xf32> to vector<1x4xf32>
    %cst_13 = arith.constant 9.800000e+01 : f32
    %23 = vector.broadcast %cst_13 : f32 to vector<1x4xf32>
    %24 = arith.divf %22, %23 : vector<1x4xf32>
    %25 = vector.extract_strided_slice %19 {offsets = [0, 0], sizes = [2, 4], strides = [1, 1]} : vector<4x4xf32> to vector<2x4xf32>
    %cst_14 = arith.constant dense<0.000000e+00> : vector<4xf32>
    %26 = vector.multi_reduction <add>, %25, %cst_14 [0] : vector<2x4xf32> to vector<4xf32>
    %27 = vector.shape_cast %26 : vector<4xf32> to vector<1x4xf32>
    %cst_15 = arith.constant 9.800000e+01 : f32
    %28 = vector.broadcast %cst_15 : f32 to vector<1x4xf32>
    %29 = arith.divf %27, %28 : vector<1x4xf32>
    %30 = arith.mulf %24, %24 : vector<1x4xf32>
    %31 = arith.subf %29, %30 : vector<1x4xf32>
    %c0_16 = arith.constant 0 : index
    %c0_17 = arith.constant 0 : index
    %32 = vector.load %arg5[%c0_16, %c0_17] : memref<1x4xf32, #tpu.memory_space<vmem>>, vector<1x4xf32>
    %cst_18 = arith.constant 9.99999974E-6 : f32
    %33 = vector.broadcast %cst_18 : f32 to vector<1x4xf32>
    %34 = arith.addf %31, %33 : vector<1x4xf32>
    %35 = math.rsqrt %34 : vector<1x4xf32>
    %36 = arith.mulf %32, %35 : vector<1x4xf32>
    %c0_19 = arith.constant 0 : index
    %c0_20 = arith.constant 0 : index
    %37 = vector.load %arg6[%c0_19, %c0_20] : memref<1x4xf32, #tpu.memory_space<vmem>>, vector<1x4xf32>
    %38 = arith.mulf %24, %36 : vector<1x4xf32>
    %39 = arith.subf %37, %38 : vector<1x4xf32>
    %c0_21 = arith.constant 0 : index
    %c0_22 = arith.constant 0 : index
    %40 = vector.load %arg4[%c0_21, %c0_22] : memref<4x256xf32, #tpu.memory_space<vmem>>, vector<4x256xf32>
    %cst_23 = arith.constant dense<0.000000e+00> : vector<1x256xf32>
    %41 = tpu.matmul %36, %40, %cst_23 {dimension_numbers = #tpu.dot_dimension_numbers<[1], [0], [0], [1], [0, 0, 1, 1], [], []>} : vector<1x4xf32>, vector<4x256xf32>, vector<1x256xf32> -> vector<1x256xf32>
    %c0_24 = arith.constant 0 : index
    %c0_25 = arith.constant 0 : index
    %42 = vector.load %arg4[%c0_24, %c0_25] : memref<4x256xf32, #tpu.memory_space<vmem>>, vector<4x256xf32>
    %cst_26 = arith.constant dense<0.000000e+00> : vector<1x256xf32>
    %43 = tpu.matmul %39, %42, %cst_26 {dimension_numbers = #tpu.dot_dimension_numbers<[1], [0], [0], [1], [0, 0, 1, 1], [], []>} : vector<1x4xf32>, vector<4x256xf32>, vector<1x256xf32> -> vector<1x256xf32>
    %44 = vector.extract_strided_slice %16 {offsets = [2, 0], sizes = [2, 4], strides = [1, 1]} : vector<4x4xf32> to vector<2x4xf32>
    %cst_27 = arith.constant dense<0.000000e+00> : vector<4xf32>
    %45 = vector.multi_reduction <add>, %44, %cst_27 [0] : vector<2x4xf32> to vector<4xf32>
    %46 = vector.shape_cast %45 : vector<4xf32> to vector<1x4xf32>
    %cst_28 = arith.constant 9.800000e+01 : f32
    %47 = vector.broadcast %cst_28 : f32 to vector<1x4xf32>
    %48 = arith.divf %46, %47 : vector<1x4xf32>
    %49 = vector.extract_strided_slice %19 {offsets = [2, 0], sizes = [2, 4], strides = [1, 1]} : vector<4x4xf32> to vector<2x4xf32>
    %cst_29 = arith.constant dense<0.000000e+00> : vector<4xf32>
    %50 = vector.multi_reduction <add>, %49, %cst_29 [0] : vector<2x4xf32> to vector<4xf32>
    %51 = vector.shape_cast %50 : vector<4xf32> to vector<1x4xf32>
    %cst_30 = arith.constant 9.800000e+01 : f32
    %52 = vector.broadcast %cst_30 : f32 to vector<1x4xf32>
    %53 = arith.divf %51, %52 : vector<1x4xf32>
    %54 = arith.mulf %48, %48 : vector<1x4xf32>
    %55 = arith.subf %53, %54 : vector<1x4xf32>
    %c0_31 = arith.constant 0 : index
    %c0_32 = arith.constant 0 : index
    %56 = vector.load %arg5[%c0_31, %c0_32] : memref<1x4xf32, #tpu.memory_space<vmem>>, vector<1x4xf32>
    %cst_33 = arith.constant 9.99999974E-6 : f32
    %57 = vector.broadcast %cst_33 : f32 to vector<1x4xf32>
    %58 = arith.addf %55, %57 : vector<1x4xf32>
    %59 = math.rsqrt %58 : vector<1x4xf32>
    %60 = arith.mulf %56, %59 : vector<1x4xf32>
    %c0_34 = arith.constant 0 : index
    %c0_35 = arith.constant 0 : index
    %61 = vector.load %arg6[%c0_34, %c0_35] : memref<1x4xf32, #tpu.memory_space<vmem>>, vector<1x4xf32>
    %62 = arith.mulf %48, %60 : vector<1x4xf32>
    %63 = arith.subf %61, %62 : vector<1x4xf32>
    %c0_36 = arith.constant 0 : index
    %c0_37 = arith.constant 0 : index
    %64 = vector.load %arg4[%c0_36, %c0_37] : memref<4x256xf32, #tpu.memory_space<vmem>>, vector<4x256xf32>
    %cst_38 = arith.constant dense<0.000000e+00> : vector<1x256xf32>
    %65 = tpu.matmul %60, %64, %cst_38 {dimension_numbers = #tpu.dot_dimension_numbers<[1], [0], [0], [1], [0, 0, 1, 1], [], []>} : vector<1x4xf32>, vector<4x256xf32>, vector<1x256xf32> -> vector<1x256xf32>
    %c0_39 = arith.constant 0 : index
    %c0_40 = arith.constant 0 : index
    %66 = vector.load %arg4[%c0_39, %c0_40] : memref<4x256xf32, #tpu.memory_space<vmem>>, vector<4x256xf32>
    %cst_41 = arith.constant dense<0.000000e+00> : vector<1x256xf32>
    %67 = tpu.matmul %63, %66, %cst_41 {dimension_numbers = #tpu.dot_dimension_numbers<[1], [0], [0], [1], [0, 0, 1, 1], [], []>} : vector<1x4xf32>, vector<4x256xf32>, vector<1x256xf32> -> vector<1x256xf32>
    %68 = tpu.iota {dimensions = array<i32: 0>} : vector<4x1xi32>
    %c2_i32 = arith.constant 2 : i32
    %69 = vector.broadcast %c2_i32 : i32 to vector<4x1xi32>
    %70 = arith.cmpi slt, %68, %69 : vector<4x1xi32>
    %71 = vector.shape_cast %70 : vector<4x1xi1> to vector<4x1xi1>
    %72 = vector.broadcast %71 : vector<4x1xi1> to vector<4x256xi1>
    %73 = vector.shape_cast %41 : vector<1x256xf32> to vector<1x256xf32>
    %74 = vector.broadcast %73 : vector<1x256xf32> to vector<4x256xf32>
    %75 = vector.shape_cast %65 : vector<1x256xf32> to vector<1x256xf32>
    %76 = vector.broadcast %75 : vector<1x256xf32> to vector<4x256xf32>
    %77 = arith.select %72, %74, %76 : vector<4x256xi1>, vector<4x256xf32>
    %78 = arith.mulf %14, %77 : vector<4x256xf32>
    %79 = vector.shape_cast %70 : vector<4x1xi1> to vector<4x1xi1>
    %80 = vector.broadcast %79 : vector<4x1xi1> to vector<4x256xi1>
    %81 = vector.shape_cast %43 : vector<1x256xf32> to vector<1x256xf32>
    %82 = vector.broadcast %81 : vector<1x256xf32> to vector<4x256xf32>
    %83 = vector.shape_cast %67 : vector<1x256xf32> to vector<1x256xf32>
    %84 = vector.broadcast %83 : vector<1x256xf32> to vector<4x256xf32>
    %85 = arith.select %80, %82, %84 : vector<4x256xi1>, vector<4x256xf32>
    %86 = arith.addf %78, %85 : vector<4x256xf32>
    %c0_42 = arith.constant 0 : index
    %c0_43 = arith.constant 0 : index
    %87 = vector.load %arg7[%c0_42, %c0_43] : memref<256x512xf32, #tpu.memory_space<vmem>>, vector<256x512xf32>
    %cst_44 = arith.constant dense<0.000000e+00> : vector<4x512xf32>
    %88 = tpu.matmul %86, %87, %cst_44 {dimension_numbers = #tpu.dot_dimension_numbers<[1], [0], [0], [1], [0, 0, 1, 1], [], []>} : vector<4x256xf32>, vector<256x512xf32>, vector<4x512xf32> -> vector<4x512xf32>
    %c0_45 = arith.constant 0 : index
    %c0_46 = arith.constant 0 : index
    %89 = vector.load %arg8[%c0_45, %c0_46] : memref<1x512xf32, #tpu.memory_space<vmem>>, vector<1x512xf32>
    %90 = vector.broadcast %89 : vector<1x512xf32> to vector<4x512xf32>
    %91 = arith.addf %88, %90 : vector<4x512xf32>
    %92 = vector.extract_strided_slice %91 {offsets = [0, 0], sizes = [4, 128], strides = [1, 1]} : vector<4x512xf32> to vector<4x128xf32>
    %93 = vector.extract_strided_slice %91 {offsets = [0, 128], sizes = [4, 128], strides = [1, 1]} : vector<4x512xf32> to vector<4x128xf32>
    %94 = arith.maximumf %92, %93 : vector<4x128xf32>
    %95 = vector.extract_strided_slice %91 {offsets = [0, 256], sizes = [4, 128], strides = [1, 1]} : vector<4x512xf32> to vector<4x128xf32>
    %96 = vector.extract_strided_slice %91 {offsets = [0, 384], sizes = [4, 128], strides = [1, 1]} : vector<4x512xf32> to vector<4x128xf32>
    %97 = arith.maximumf %95, %96 : vector<4x128xf32>
    %98 = arith.maximumf %94, %97 : vector<4x128xf32>
    %cst_47 = arith.constant 0.000000e+00 : f32
    %99 = vector.broadcast %cst_47 : f32 to vector<4x128xf32>
    %100 = arith.maximumf %98, %99 : vector<4x128xf32>
    %c0_48 = arith.constant 0 : index
    %c0_49 = arith.constant 0 : index
    %101 = vector.load %arg9[%c0_48, %c0_49] : memref<128x32xf32, #tpu.memory_space<vmem>>, vector<128x32xf32>
    %cst_50 = arith.constant dense<0.000000e+00> : vector<4x32xf32>
    %102 = tpu.matmul %100, %101, %cst_50 {dimension_numbers = #tpu.dot_dimension_numbers<[1], [0], [0], [1], [0, 0, 1, 1], [], []>} : vector<4x128xf32>, vector<128x32xf32>, vector<4x32xf32> -> vector<4x32xf32>
    %c0_51 = arith.constant 0 : index
    %c0_52 = arith.constant 0 : index
    %103 = vector.load %arg10[%c0_51, %c0_52] : memref<1x32xf32, #tpu.memory_space<vmem>>, vector<1x32xf32>
    %104 = vector.broadcast %103 : vector<1x32xf32> to vector<4x32xf32>
    %105 = arith.addf %102, %104 : vector<4x32xf32>
    %cst_53 = arith.constant 0.000000e+00 : f32
    %106 = vector.broadcast %cst_53 : f32 to vector<4x32xf32>
    %107 = arith.maximumf %105, %106 : vector<4x32xf32>
    %c0_54 = arith.constant 0 : index
    %c0_55 = arith.constant 0 : index
    %108 = vector.load %arg11[%c0_54, %c0_55] : memref<32x10xf32, #tpu.memory_space<vmem>>, vector<32x10xf32>
    %cst_56 = arith.constant dense<0.000000e+00> : vector<4x10xf32>
    %109 = tpu.matmul %107, %108, %cst_56 {dimension_numbers = #tpu.dot_dimension_numbers<[1], [0], [0], [1], [0, 0, 1, 1], [], []>} : vector<4x32xf32>, vector<32x10xf32>, vector<4x10xf32> -> vector<4x10xf32>
    %c0_57 = arith.constant 0 : index
    %c0_58 = arith.constant 0 : index
    %110 = vector.load %arg12[%c0_57, %c0_58] : memref<1x10xf32, #tpu.memory_space<vmem>>, vector<1x10xf32>
    %111 = vector.broadcast %110 : vector<1x10xf32> to vector<4x10xf32>
    %112 = arith.addf %109, %111 : vector<4x10xf32>
    %113 = vector.extract_strided_slice %112 {offsets = [0, 0], sizes = [2, 10], strides = [1, 1]} : vector<4x10xf32> to vector<2x10xf32>
    %c0_59 = arith.constant 0 : index
    %c0_60 = arith.constant 0 : index
    %114 = vector.load %arg19[%c0_59, %c0_60] : memref<2x10xf32, #tpu.memory_space<vmem>>, vector<2x10xf32>
    tpu.vector_store %arg19[%c0_59, %c0_60], %113 {strides = array<i32>} : memref<2x10xf32, #tpu.memory_space<vmem>>, vector<2x10xf32>,
    %115 = vector.extract_strided_slice %112 {offsets = [2, 0], sizes = [2, 10], strides = [1, 1]} : vector<4x10xf32> to vector<2x10xf32>
    %c0_61 = arith.constant 0 : index
    %c0_62 = arith.constant 0 : index
    %116 = vector.load %arg20[%c0_61, %c0_62] : memref<2x10xf32, #tpu.memory_space<vmem>>, vector<2x10xf32>
    tpu.vector_store %arg20[%c0_61, %c0_62], %115 {strides = array<i32>} : memref<2x10xf32, #tpu.memory_space<vmem>>, vector<2x10xf32>,
    %cst_63 = arith.constant dense<0xFF800000> : vector<4xf32>
    %117 = vector.multi_reduction <maximumf>, %112, %cst_63 [1] : vector<4x10xf32> to vector<4xf32>
    %118 = vector.shape_cast %117 : vector<4xf32> to vector<4x1xf32>
    %119 = vector.broadcast %118 : vector<4x1xf32> to vector<4x10xf32>
    %120 = arith.subf %112, %119 : vector<4x10xf32>
    %121 = math.exp %120 : vector<4x10xf32>
    %cst_64 = arith.constant dense<0.000000e+00> : vector<4xf32>
    %122 = vector.multi_reduction <add>, %121, %cst_64 [1] : vector<4x10xf32> to vector<4xf32>
    %123 = vector.shape_cast %122 : vector<4xf32> to vector<4x1xf32>
    %124 = vector.broadcast %123 : vector<4x1xf32> to vector<4x10xf32>
    %125 = arith.divf %121, %124 : vector<4x10xf32>
    %126 = vector.extract_strided_slice %125 {offsets = [0, 0], sizes = [2, 10], strides = [1, 1]} : vector<4x10xf32> to vector<2x10xf32>
    %c0_65 = arith.constant 0 : index
    %c0_66 = arith.constant 0 : index
    %127 = vector.load %arg13[%c0_65, %c0_66] : memref<10x16xf32, #tpu.memory_space<vmem>>, vector<10x16xf32>
    %cst_67 = arith.constant dense<0.000000e+00> : vector<2x16xf32>
    %128 = tpu.matmul %126, %127, %cst_67 {dimension_numbers = #tpu.dot_dimension_numbers<[1], [0], [0], [1], [0, 0, 1, 1], [], []>} : vector<2x10xf32>, vector<10x16xf32>, vector<2x16xf32> -> vector<2x16xf32>
    %129 = vector.extract_strided_slice %125 {offsets = [2, 0], sizes = [2, 10], strides = [1, 1]} : vector<4x10xf32> to vector<2x10xf32>
    %c0_68 = arith.constant 0 : index
    %c0_69 = arith.constant 0 : index
    %130 = vector.load %arg14[%c0_68, %c0_69] : memref<10x16xf32, #tpu.memory_space<vmem>>, vector<10x16xf32>
    %cst_70 = arith.constant dense<0.000000e+00> : vector<2x16xf32>
    %131 = tpu.matmul %129, %130, %cst_70 {dimension_numbers = #tpu.dot_dimension_numbers<[1], [0], [0], [1], [0, 0, 1, 1], [], []>} : vector<2x10xf32>, vector<10x16xf32>, vector<2x16xf32> -> vector<2x16xf32>
    %132 = arith.addf %128, %131 : vector<2x16xf32>
    %c0_71 = arith.constant 0 : index
    %c0_72 = arith.constant 0 : index
    %133 = vector.load %arg15[%c0_71, %c0_72] : memref<1x16xf32, #tpu.memory_space<vmem>>, vector<1x16xf32>
    %134 = vector.broadcast %133 : vector<1x16xf32> to vector<2x16xf32>
    %135 = arith.addf %132, %134 : vector<2x16xf32>
    %cst_73 = arith.constant 0.000000e+00 : f32
    %136 = vector.broadcast %cst_73 : f32 to vector<2x16xf32>
    %137 = arith.maximumf %135, %136 : vector<2x16xf32>
    %c0_74 = arith.constant 0 : index
    %c0_75 = arith.constant 0 : index
    %138 = vector.load %arg16[%c0_74, %c0_75] : memref<16x2xf32, #tpu.memory_space<vmem>>, vector<16x2xf32>
    %cst_76 = arith.constant dense<0.000000e+00> : vector<2x2xf32>
    %139 = tpu.matmul %137, %138, %cst_76 {dimension_numbers = #tpu.dot_dimension_numbers<[1], [0], [0], [1], [0, 0, 1, 1], [], []>} : vector<2x16xf32>, vector<16x2xf32>, vector<2x2xf32> -> vector<2x2xf32>
    %c0_77 = arith.constant 0 : index
    %c0_78 = arith.constant 0 : index
    %140 = vector.load %arg17[%c0_77, %c0_78] : memref<1x2xf32, #tpu.memory_space<vmem>>, vector<1x2xf32>
    %141 = vector.broadcast %140 : vector<1x2xf32> to vector<2x2xf32>
    %142 = arith.addf %139, %141 : vector<2x2xf32>
    %c0_79 = arith.constant 0 : index
    %c0_80 = arith.constant 0 : index
    %143 = vector.load %arg18[%c0_79, %c0_80] : memref<2x2xf32, #tpu.memory_space<vmem>>, vector<2x2xf32>
    tpu.vector_store %arg18[%c0_79, %c0_80], %142 {strides = array<i32>} : memref<2x2xf32, #tpu.memory_space<vmem>>, vector<2x2xf32>,
    return
  }
}

</mosaic_0001>

<bundles_post_ra>
// kernel: squeeze.2
= control target key start
LH: loop header
LB: loop body
LE: loop exit
PB: predicated region body
PF: predicated region fallthrough
CT: control target
= control target key end

     0   :  { %s7_s6 = smov 3  ;;  %s10_s7 = smov 3  ;;  %vm12_vm0 = vcmask 15360   ;;  %vm4_vm1 = vcmask 113664   ;;  %vm16_vm2 = vcmask 97280   ;;  %vm19_vm3 = vcmask 1048560   ;;  %s225_s0 = inlined_call_operand.vmem [shape: f32[2,14,14], index: 0, kind: input, shape index: {}]   ;;  %s226_s1 = inlined_call_operand.vmem [shape: f32[2,196], index: 1, kind: output, shape index: {}]  }
   0x1   :  { %v123_v0 = vld [vmem:[%s225_s0 + $0x9] ss:$16 sm:%s7_s6]   ;;  %s29_s12 = smov 3  ;;  %s22_s15 = smov 3  ;;  %vm26_vm4 = vcmask 1032064   ;;  %vm33_vm5 = vcmask 917264  }
   0x2   :  { %v124_v1 = vld [vmem:[%s225_s0 + $0x9] ss:$16 sm:%s10_s7]   ;;  %v126_v3 = vld [vmem:[%s225_s0 + $0x7] ss:$16 sm:%s29_s12]   ;;  %s151_s16 = smov 126   ;;  %s152_s17 = smov 98  }
   0x3   :  { %v13_v2 = vsel %vm12_vm0, %v124_v1, %v123_v0  ;;  %31 = vrot.lane.b32.xlu1 %v126_v3, %s152_s17  ;;  %s36_s18 = smov 3  ;;  %v125_v4 = vld [vmem:[%s225_s0 + $0x8] ss:$16 sm:%s22_s15]   ;;  %s43_s23 = smov 3  ;;  %vm40_vm6 = vcmask 802464   ;;  %vm47_vm7 = vcmask 687664  }
   0x4   :  { %14 = vrot.lane.b32.xlu0 %v13_v2, %s151_s16  ;;  %v127_v5 = vld [vmem:[%s225_s0 + $0x6] ss:$16 sm:%s36_s18]   ;;  %s50_s24 = smov 3  ;;  %s153_s25 = smov 112   ;;  %vm54_vm8 = vcmask 572864   ;;  %vm61_vm9 = vcmask 556464  }
   0x5   :  { %s154_s26 = smov 84   ;;  %v128_v6 = vld [vmem:[%s225_s0 + $0x5] ss:$16 sm:%s43_s23]   ;;  %v129_v7 = vld [vmem:[%s225_s0 + $0x4] ss:$16 sm:%s50_s24]   ;;  %s57_s2 = smov 3 }
   0x6   :  { %s65_s3 = smov 3  ;;  %s155_s4 = smov 70   ;;  %v130_v8 = vld [vmem:[%s225_s0 + $0xd] ss:$16 sm:%s57_s2]   ;;  %vm69_vm10 = vcmask 458064   ;;  %vm76_vm11 = vcmask 441664  }
   0x7   :  { %38 = vrot.lane.b32.xlu1 %v127_v5, %s154_s26  ;;  %s156_s5 = smov 56   ;;  %v131_v9 = vld [vmem:[%s225_s0 + $0x3] ss:$16 sm:%s65_s3]   ;;  %s72_s10 = smov 3  ;;  %vm84_vm12 = vcmask 343264   ;;  %vm91_vm13 = vcmask 326864  }
   0x8   :  { %24 = vrot.lane.b32.xlu0 %v125_v4, %s153_s25  ;;  %s80_s11 = smov 3  ;;  %s2_s12 = smov 3  ;;  %v132_v11 = vld [vmem:[%s225_s0 + $0xc] ss:$16 sm:%s72_s10]   ;;  %vm99_vm14 = vcmask 228464   ;;  %vm106_vm15 = vcmask 212064  }
   0x9   :  { %v3_v10 = vld [vmem:[%s225_s0] ss:$16 sm:%s2_s12]   ;;  %s157_s15 = smov 54   ;;  %s158_s16 = smov 42   ;;  %v133_v12 = vld [vmem:[%s225_s0 + $0x2] ss:$16 sm:%s80_s11]  }
   0xa   :  { %5 = vst.msk [vmem:[#allocation0] sm:$0x3] %vm4_vm1, %v3_v10   ;;  %s87_s21 = smov 3  ;;  %s95_s22 = smov 3 }
   0xb   :  { %52 = vrot.lane.b32.xlu1 %v129_v7, %s156_s5  ;;  %s159_s23 = smov 40   ;;  %s160_s24 = smov 28   ;;  %v134_v13 = vld [vmem:[%s225_s0 + $0xb] ss:$16 sm:%s87_s21]  }
   0xc   :  { %45 = vrot.lane.b32.xlu0 %v128_v6, %s155_s4  ;;  %v135_v14 = vld [vmem:[%s225_s0 + $0x1] ss:$16 sm:%s95_s22]   ;;  %s102_s29 = smov 3  ;;  %s161_s30 = smov 26  }
   0xd   :  { %s162_s2 = smov 14   ;;  %v136_v15 = vld [vmem:[%s225_s0 + $0xa] ss:$16 sm:%s102_s29]   ;;  %s163_s0 = smov 12  }
   0xf   :  { %67 = vrot.lane.b32.xlu1 %v131_v9, %s158_s16 }
  0x10   :  { %59 = vrot.lane.b32.xlu0 %v130_v8, %s157_s15 }
  0x13   :  { %82 = vrot.lane.b32.xlu1 %v133_v12, %s160_s24 }
  0x14   :  { %74 = vrot.lane.b32.xlu0 %v132_v11, %s159_s23 }
  0x17   :  { %97 = vrot.lane.b32.xlu1 %v135_v14, %s162_s2 }
  0x18   :  { %89 = vrot.lane.b32.xlu0 %v134_v13, %s161_s30 }
  0x1c   :  { %104 = vrot.lane.b32.xlu0 %v136_v15, %s163_s0 }
  0x75   :  { %v32_v17 = vpop.permute.xlu1 %31  }
  0x76   :  { %v15_v16 = vpop.permute.xlu0 %14  }
  0x77   :  { %18 = vst.msk [vmem:[#allocation0 + $0x8] sm:$0x3] %vm16_vm2, %v15_v16  }
  0x78   :  { %20 = vst.msk [vmem:[#allocation0] sm:$0x3] %vm19_vm3, %v15_v16  }
  0x79   :  { %v39_v19 = vpop.permute.xlu1 %38  }
  0x7a   :  { %v25_v18 = vpop.permute.xlu0 %24  }
  0x7b   :  { %27 = vst.msk [vmem:[#allocation0] sm:$0x3] %vm26_vm4, %v25_v18  }
  0x7c   :  { %34 = vst.msk [vmem:[#allocation0] sm:$0x3] %vm33_vm5, %v32_v17  }
  0x7d   :  { %41 = vst.msk [vmem:[#allocation0] sm:$0x3] %vm40_vm6, %v39_v19   ;;  %v53_v21 = vpop.permute.xlu1 %52  }
  0x7e   :  { %v46_v20 = vpop.permute.xlu0 %45  }
  0x7f   :  { %48 = vst.msk [vmem:[#allocation0] sm:$0x3] %vm47_vm7, %v46_v20  }
  0x80   :  { %55 = vst.msk [vmem:[#allocation0] sm:$0x3] %vm54_vm8, %v53_v21  }
  0x81   :  { %v68_v23 = vpop.permute.xlu1 %67  }
  0x82   :  { %v60_v22 = vpop.permute.xlu0 %59   ;;  %70 = vst.msk [vmem:[#allocation0] sm:$0x3] %vm69_vm10, %v68_v23  }
  0x83   :  { %63 = vst.msk [vmem:[#allocation0 + $0x8] sm:$0x3] %vm61_vm9, %v60_v22  }
  0x85   :  { %v83_v25 = vpop.permute.xlu1 %82  }
  0x86   :  { %v75_v24 = vpop.permute.xlu0 %74   ;;  %85 = vst.msk [vmem:[#allocation0] sm:$0x3] %vm84_vm12, %v83_v25  }
  0x87   :  { %78 = vst.msk [vmem:[#allocation0 + $0x8] sm:$0x3] %vm76_vm11, %v75_v24  }
  0x89   :  { %v98_v27 = vpop.permute.xlu1 %97  }
  0x8a   :  { %v90_v26 = vpop.permute.xlu0 %89   ;;  %100 = vst.msk [vmem:[#allocation0] sm:$0x3] %vm99_vm14, %v98_v27  }
  0x8b   :  { %93 = vst.msk [vmem:[#allocation0 + $0x8] sm:$0x3] %vm91_vm13, %v90_v26  }
  0x8e   :  { %v105_v28 = vpop.permute.xlu0 %104  }
  0x8f   :  { %108 = vst.msk [vmem:[#allocation0 + $0x8] sm:$0x3] %vm106_vm15, %v105_v28  }
  0x91   :  { %v113_v29 = vld [vmem:[#allocation0] sm:$0x3] }
  0x92   :  { %116 = vst [vmem:[%s226_s1] sm:$0x3] %v113_v29 }
  0x96   :  { %v118_v30 = vld [vmem:[#allocation0 + $0x8] sm:$0x3] }
  0x97   :  { %137 = vst [vmem:[%s226_s1 + $0x2] sm:$0x3] %v118_v30 }

// kernel: _lambda_.1
= control target key start
LH: loop header
LB: loop body
LE: loop exit
PB: predicated region body
PF: predicated region fallthrough
CT: control target
= control target key end

     0   :  { %s2773_s0 = inlined_call_operand.vmem [shape: f32[4,196], index: 0, kind: input, shape index: {}]   ;;  %s2774_s1 = inlined_call_operand.hbm [shape: f32[196,1024], index: 1, kind: input, shape index: {}]   ;;  %s2775_s2 = inlined_call_operand.vmem [shape: f32[1,1024], index: 2, kind: input, shape index: {}]   ;;  %s2776_s3 = inlined_call_operand.hbm [shape: f32[256,4], index: 3, kind: input, shape index: {}]   ;;  %s2777_s4 = inlined_call_operand.vmem [shape: f32[4,256], index: 4, kind: input, shape index: {}]   ;;  %s2778_s5 = inlined_call_operand.vmem [shape: f32[1,4], index: 5, kind: input, shape index: {}]   ;;  %s2779_s6 = inlined_call_operand.vmem [shape: f32[1,4], index: 6, kind: input, shape index: {}]   ;;  %s2780_s7 = inlined_call_operand.hbm [shape: f32[256,512], index: 7, kind: input, shape index: {}]   ;;  %s2781_s8 = inlined_call_operand.vmem [shape: f32[1,512], index: 8, kind: input, shape index: {}]   ;;  %s2782_s9 = inlined_call_operand.vmem [shape: f32[128,32], index: 9, kind: input, shape index: {}]   ;;  %s2783_s10 = inlined_call_operand.vmem [shape: f32[1,32], index: 10, kind: input, shape index: {}]   ;;  %s2784_s11 = inlined_call_operand.vmem [shape: f32[32,10], index: 11, kind: input, shape index: {}]   ;;  %s2785_s12 = inlined_call_operand.vmem [shape: f32[1,10], index: 12, kind: input, shape index: {}]   ;;  %s2786_s13 = inlined_call_operand.vmem [shape: f32[10,16], index: 13, kind: input, shape index: {}]   ;;  %s2787_s14 = inlined_call_operand.vmem [shape: f32[10,16], index: 14, kind: input, shape index: {}]   ;;  %s2788_s15 = inlined_call_operand.vmem [shape: f32[1,16], index: 15, kind: input, shape index: {}]   ;;  %s2789_s16 = inlined_call_operand.vmem [shape: f32[16,2], index: 16, kind: input, shape index: {}]   ;;  %s2790_s17 = inlined_call_operand.vmem [shape: f32[1,2], index: 17, kind: input, shape index: {}]   ;;  %s2791_s18 = inlined_call_operand.hbm [shape: f32[2,2], index: 18, kind: output, shape index: {0}]   ;;  %s2792_s19 = inlined_call_operand.hbm [shape: f32[2,10], index: 19, kind: output, shape index: {1}]   ;;  %s2793_s20 = inlined_call_operand.hbm [shape: f32[2,10], index: 20, kind: output, shape index: {2}]  }
   0x1   :  { %2794 = sst [smem:[#allocation16_spill]] %s2773_s0 }
   0x2   :  { %2795 = sst [smem:[#allocation17_spill]] %s2774_s1 }
   0x3   :  { %2796 = sst [smem:[#allocation18_spill]] %s2775_s2 }
   0x4   :  { %2797 = sst [smem:[#allocation19_spill]] %s2776_s3 }
   0x5   :  { %2798 = sst [smem:[#allocation20_spill]] %s2777_s4 }
   0x6   :  { %2799 = sst [smem:[#allocation21_spill]] %s2791_s18 }
   0x7   :  { %26 = vsyncpa [#allocation3], 0 }
   0x8   :  { %27 = vsyncpa [#allocation6], 0 }
   0x9   :  { %28 = vsyncpa [#allocation4], 0 }
   0xa   :  { %29 = vsyncpa [#allocation10], 0  ;;  %s2389_s1 = smov [#allocation5]  }
   0xb   :  { %s51_s22 = sshll.u32 %s2389_s1, 4  ;;  %s52_s22 = int_to_ptr.vmem [resolvable:$true] %s51_s22 }
   0xc   :  { %s2269_s23 = scalar_lea.vmem %s52_s22, 4096  ;;  %p2274_p1 = scmp.lt.s32.totalorder %s52_s22, %s52_s22 }
   0xd   :  { %p2270_p0 = scmp.ne.s32.totalorder %s52_s22, %s2269_s23  ;;  %p2275_p2 = scmp.lt.s32.totalorder %s2269_s23, %s2269_s23 }
   0xf   :  { %p2276_p3 = por %p2275_p2, %p2274_p1 }
  0x11   :  { %p2277_p4 = pnand %p2276_p3, %p2270_p0 }
  0x13   :  { %2280 = shalt.err (!%p2277_p4)
}
  0x14   :  { %s2390_s24 = smov 128   ;;  %s2391_s2 = smov 8  }
  0x15   :  { %s2800_s26 = sld [smem:[#allocation19_spill]]  ;;  %s2392_s27 = smov [#allocation2]  }
  0x16   :  { %s37_s28 = sshll.u32 %s2392_s27, 4  ;;  %s38_s28 = int_to_ptr.vmem [resolvable:$true] %s37_s28 }
  0x17   :  { %s2289_s4 = scalar_lea.vmem %s38_s28, 25600  ;;  %p2294_p6 = scmp.lt.s32.totalorder %s38_s28, %s38_s28 }
  0x18   :  { %p2290_p5 = scmp.ne.s32.totalorder %s38_s28, %s2289_s4  ;;  %p2295_p7 = scmp.lt.s32.totalorder %s2289_s4, %s2289_s4 }
  0x1a   :  { %p2296_p8 = por %p2295_p7, %p2294_p6 }
  0x1b   :  { %57 = dma.hbm_to_vmem [thread:$0]  %s2800_s26, 4096, %s52_s22, [#allocation6], %s2390_s24, %s2390_s24, %s2391_s2  }
  0x1c   :  { %p2297_p9 = pnand %p2296_p8, %p2290_p5 }
  0x1e   :  { %2300 = shalt.err (!%p2297_p9)
}
  0x1f   :  { %s2393_s29 = smov 1024   ;;  %s2394_s30 = smov 64  }
  0x20   :  { %s2801_s1 = sld [smem:[#allocation17_spill]]  ;;  %s2395_s23 = smov [#allocation7]  }
  0x21   :  { %s69_s18 = sshll.u32 %s2395_s23, 4  ;;  %s70_s18 = int_to_ptr.vmem [resolvable:$true] %s69_s18 }
  0x22   :  { %s2309_s22 = scalar_lea.vmem %s70_s18, 16384  ;;  %p2314_p11 = scmp.lt.s32.totalorder %s70_s18, %s70_s18 }
  0x23   :  { %p2310_p10 = scmp.ne.s32.totalorder %s70_s18, %s2309_s22  ;;  %p2315_p12 = scmp.lt.s32.totalorder %s2309_s22, %s2309_s22 }
  0x25   :  { %p2316_p13 = por %p2315_p12, %p2314_p11 }
  0x26   :  { %43 = dma.hbm_to_vmem [thread:$0]  %s2801_s1, 25600, %s38_s28, [#allocation3], %s2393_s29, %s2393_s29, %s2394_s30  }
  0x27   :  { %p2317_p0 = pnand %p2316_p13, %p2310_p10 }
  0x29   :  { %2320 = shalt.err (!%p2317_p0)
}
  0x2a   :  { %s2396_s24 = smov 512   ;;  %s2397_s2 = smov 32  }
  0x2b   :  { %75 = dma.hbm_to_vmem [thread:$0]  %s2780_s7, 16384, %s70_s18, [#allocation6], %s2396_s24, %s2396_s24, %s2397_s2  }
  0x2c   :  { %2381 = dma.done.wait [#allocation3], 25600  }
  0x2d   :  { %2382 = vsyncadd [#allocation3], 4294941696 }
  0x2e   :  { %2383 = dma.done.wait [#allocation6], 20480  }
  0x2f   :  { %2384 = vsyncadd [#allocation6], 4294946816  ;;  %v227_v0 = vld [vmem:[#allocation2 + $0x3c8] sm:$0xff]  ;;  %v229_v1 = vld [vmem:[#allocation2 + $0x3d8] sm:$0xff]  ;;  %vm353_vm0 = vcmask 1043456   ;;  %s2802_s26 = sld [smem:[#allocation16_spill]] }
  0x30   :  { %v226_v2 = vld [vmem:[#allocation2 + $0x3c0] sm:$0xff]  ;;  %378 = vmatprep.subr.mxu0 %v227_v0  ;;  %449 = vmatprep.subr.mxu1 %v229_v1  ;;  %v228_v3 = vld [vmem:[#allocation2 + $0x3d0] sm:$0xff]  ;;  %v219_v4 = vld [vmem:[#allocation2 + $0x388] sm:$0xff]  ;;  %vm350_vm1 = vcmask 556032   ;;  %s2803_s4 = sld [smem:[#allocation18_spill]]  ;;  %vm844_vm2 = vcmask 25600  }
  0x31   :  { %v221_v5 = vld [vmem:[#allocation2 + $0x398] sm:$0xff]  ;;  %379 = vmatpush1.msra.mxu0 %v226_v2  ;;  %450 = vmatpush1.msra.mxu1 %v228_v3  ;;  %v218_v6 = vld [vmem:[#allocation2 + $0x380] sm:$0xff]  ;;  %v220_v7 = vld [vmem:[#allocation2 + $0x390] sm:$0xff]  ;;  %s2804_s0 = sld [smem:[#allocation20_spill]]  ;;  %vm874_vm3 = vcmask 31744   ;;  %vm2399_vm5 = vmmov 0  }
  0x32   :  { %v211_v8 = vld [vmem:[#allocation2 + $0x348] sm:$0xff]  ;;  %380 = vmatprep.subr.mxu0 %v219_v4  ;;  %451 = vmatprep.subr.mxu1 %v221_v5  ;;  %v213_v9 = vld [vmem:[#allocation2 + $0x358] sm:$0xff]  ;;  %v210_v10 = vld [vmem:[#allocation2 + $0x340] sm:$0xff]  ;;  %vm1650_vm6 = vcmask 261120   ;;  %vm1728_vm7 = vcmask 76800   ;;  %vm1724_vm8 = vcmask 74752  }
  0x33   :  { %v212_v11 = vld [vmem:[#allocation2 + $0x350] sm:$0xff]  ;;  %381 = vmatpush1.msra.mxu0 %v218_v6  ;;  %452 = vmatpush1.msra.mxu1 %v220_v7  ;;  %v203_v12 = vld [vmem:[#allocation2 + $0x308] sm:$0xff]  ;;  %v205_v13 = vld [vmem:[#allocation2 + $0x318] sm:$0xff]  ;;  %vm1726_vm9 = vcmask 76802   ;;  %vm1749_vm10 = vcmask 1041408   ;;  %vm1746_vm11 = vcmask 80896  }
  0x34   :  { %382 = vmatprep.subr.mxu0 %v211_v8  ;;  %453 = vmatprep.subr.mxu1 %v213_v9  ;;  %v202_v14 = vld [vmem:[#allocation2 + $0x300] sm:$0xff]  ;;  %v204_v15 = vld [vmem:[#allocation2 + $0x310] sm:$0xff]  ;;  %v195_v16 = vld [vmem:[#allocation2 + $0x2c8] sm:$0xff]  ;;  %vm1916_vm12 = vcmask 130048   ;;  %s2400_s21 = smov [#allocation9]  }
  0x35   :  { %383 = vmatpush1.msra.mxu0 %v210_v10  ;;  %454 = vmatpush1.msra.mxu1 %v212_v11  ;;  %v197_v17 = vld [vmem:[#allocation2 + $0x2d8] sm:$0xff]  ;;  %v194_v18 = vld [vmem:[#allocation2 + $0x2c0] sm:$0xff]  ;;  %v196_v19 = vld [vmem:[#allocation2 + $0x2d0] sm:$0xff]  ;;  %s2008_s1 = sshll.u32 %s2400_s21, 4  ;;  %s2009_s1 = int_to_ptr.vmem [resolvable:$true] %s2008_s1 }
  0x36   :  { %384 = vmatprep.subr.mxu0 %v203_v12  ;;  %455 = vmatprep.subr.mxu1 %v205_v13  ;;  %v187_v20 = vld [vmem:[#allocation2 + $0x288] sm:$0xff]  ;;  %v189_v21 = vld [vmem:[#allocation2 + $0x298] sm:$0xff]  ;;  %v186_v22 = vld [vmem:[#allocation2 + $0x280] sm:$0xff]  ;;  %p2326_p2 = scmp.lt.s32.totalorder %s2009_s1, %s2009_s1 }
  0x37   :  { %385 = vmatpush1.msra.mxu0 %v202_v14  ;;  %456 = vmatpush1.msra.mxu1 %v204_v15  ;;  %v188_v23 = vld [vmem:[#allocation2 + $0x290] sm:$0xff]  ;;  %v179_v24 = vld [vmem:[#allocation2 + $0x248] sm:$0xff]  ;;  %v181_v25 = vld [vmem:[#allocation2 + $0x258] sm:$0xff] }
  0x38   :  { %386 = vmatprep.subr.mxu0 %v195_v16  ;;  %457 = vmatprep.subr.mxu1 %v197_v17  ;;  %v178_v26 = vld [vmem:[#allocation2 + $0x240] sm:$0xff]  ;;  %v180_v27 = vld [vmem:[#allocation2 + $0x250] sm:$0xff]  ;;  %v171_v28 = vld [vmem:[#allocation2 + $0x208] sm:$0xff] }
  0x39   :  { %387 = vmatpush1.msra.mxu0 %v194_v18  ;;  %458 = vmatpush1.msra.mxu1 %v196_v19  ;;  %v173_v29 = vld [vmem:[#allocation2 + $0x218] sm:$0xff]  ;;  %v170_v30 = vld [vmem:[#allocation2 + $0x200] sm:$0xff]  ;;  %v172_v31 = vld [vmem:[#allocation2 + $0x210] sm:$0xff] }
  0x3a   :  { %388 = vmatprep.subr.mxu0 %v187_v20  ;;  %459 = vmatprep.subr.mxu1 %v189_v21  ;;  %v163_v32 = vld [vmem:[#allocation2 + $0x1c8] sm:$0xff]  ;;  %v165_v33 = vld [vmem:[#allocation2 + $0x1d8] sm:$0xff]  ;;  %v162_v34 = vld [vmem:[#allocation2 + $0x1c0] sm:$0xff] }
  0x3b   :  { %389 = vmatpush1.msra.mxu0 %v186_v22  ;;  %460 = vmatpush1.msra.mxu1 %v188_v23  ;;  %v164_v35 = vld [vmem:[#allocation2 + $0x1d0] sm:$0xff]  ;;  %v155_v36 = vld [vmem:[#allocation2 + $0x188] sm:$0xff]  ;;  %v157_v37 = vld [vmem:[#allocation2 + $0x198] sm:$0xff] }
  0x3c   :  { %390 = vmatprep.subr.mxu0 %v179_v24  ;;  %461 = vmatprep.subr.mxu1 %v181_v25  ;;  %v154_v38 = vld [vmem:[#allocation2 + $0x180] sm:$0xff]  ;;  %v156_v39 = vld [vmem:[#allocation2 + $0x190] sm:$0xff]  ;;  %v147_v40 = vld [vmem:[#allocation2 + $0x148] sm:$0xff] }
  0x3d   :  { %391 = vmatpush1.msra.mxu0 %v178_v26  ;;  %462 = vmatpush1.msra.mxu1 %v180_v27  ;;  %v149_v41 = vld [vmem:[#allocation2 + $0x158] sm:$0xff]  ;;  %v146_v42 = vld [vmem:[#allocation2 + $0x140] sm:$0xff]  ;;  %v148_v43 = vld [vmem:[#allocation2 + $0x150] sm:$0xff] }
  0x3e   :  { %392 = vmatprep.subr.mxu0 %v171_v28  ;;  %463 = vmatprep.subr.mxu1 %v173_v29  ;;  %v139_v44 = vld [vmem:[#allocation2 + $0x108] sm:$0xff]  ;;  %v141_v45 = vld [vmem:[#allocation2 + $0x118] sm:$0xff]  ;;  %v138_v46 = vld [vmem:[#allocation2 + $0x100] sm:$0xff] }
  0x3f   :  { %393 = vmatpush1.msra.mxu0 %v170_v30  ;;  %464 = vmatpush1.msra.mxu1 %v172_v31  ;;  %v140_v47 = vld [vmem:[#allocation2 + $0x110] sm:$0xff]  ;;  %v131_v48 = vld [vmem:[#allocation2 + $0xc8] sm:$0xff]  ;;  %v133_v49 = vld [vmem:[#allocation2 + $0xd8] sm:$0xff] }
  0x40   :  { %394 = vmatprep.subr.mxu0 %v163_v32  ;;  %465 = vmatprep.subr.mxu1 %v165_v33  ;;  %v130_v50 = vld [vmem:[#allocation2 + $0xc0] sm:$0xff]  ;;  %v132_v51 = vld [vmem:[#allocation2 + $0xd0] sm:$0xff]  ;;  %v123_v52 = vld [vmem:[#allocation2 + $0x88] sm:$0xff] }
  0x41   :  { %395 = vmatpush1.msra.mxu0 %v162_v34  ;;  %466 = vmatpush1.msra.mxu1 %v164_v35  ;;  %v125_v53 = vld [vmem:[#allocation2 + $0x98] sm:$0xff]  ;;  %v122_v54 = vld [vmem:[#allocation2 + $0x80] sm:$0xff]  ;;  %v124_v55 = vld [vmem:[#allocation2 + $0x90] sm:$0xff] }
  0x42   :  { %396 = vmatprep.subr.mxu0 %v155_v36  ;;  %467 = vmatprep.subr.mxu1 %v157_v37  ;;  %v115_v56 = vld [vmem:[#allocation2 + $0x48] sm:$0xff]  ;;  %v117_v57 = vld [vmem:[#allocation2 + $0x58] sm:$0xff]  ;;  %v114_v58 = vld [vmem:[#allocation2 + $0x40] sm:$0xff] }
  0x43   :  { %397 = vmatpush1.msra.mxu0 %v154_v38  ;;  %468 = vmatpush1.msra.mxu1 %v156_v39  ;;  %v116_v59 = vld [vmem:[#allocation2 + $0x50] sm:$0xff]  ;;  %v107_v60 = vld [vmem:[#allocation2 + $0x8] sm:$0xff]  ;;  %v109_v61 = vld [vmem:[#allocation2 + $0x18] sm:$0xff] }
  0x44   :  { %398 = vmatprep.subr.mxu0 %v147_v40  ;;  %469 = vmatprep.subr.mxu1 %v149_v41  ;;  %v106_v62 = vld [vmem:[#allocation2] sm:$0xff]  ;;  %v108_v63 = vld [vmem:[#allocation2 + $0x10] sm:$0xff]  ;;  %v299_v0 = vld [vmem:[#allocation2 + $0x608] sm:$0xf] }
  0x45   :  { %399 = vmatpush1.msra.mxu0 %v146_v42  ;;  %470 = vmatpush1.msra.mxu1 %v148_v43  ;;  %v301_v1 = vld [vmem:[#allocation2 + $0x618] sm:$0xf]  ;;  %v298_v2 = vld [vmem:[#allocation2 + $0x600] sm:$0xf]  ;;  %v300_v3 = vld [vmem:[#allocation2 + $0x610] sm:$0xf] }
  0x46   :  { %400 = vmatprep.subr.mxu0 %v139_v44  ;;  %471 = vmatprep.subr.mxu1 %v141_v45  ;;  %v291_v4 = vld [vmem:[#allocation2 + $0x5c8] sm:$0xff]  ;;  %v293_v5 = vld [vmem:[#allocation2 + $0x5d8] sm:$0xff]  ;;  %v290_v6 = vld [vmem:[#allocation2 + $0x5c0] sm:$0xff] }
  0x47   :  { %401 = vmatpush1.msra.mxu0 %v138_v46  ;;  %472 = vmatpush1.msra.mxu1 %v140_v47  ;;  %v292_v7 = vld [vmem:[#allocation2 + $0x5d0] sm:$0xff]  ;;  %v283_v8 = vld [vmem:[#allocation2 + $0x588] sm:$0xff]  ;;  %v285_v9 = vld [vmem:[#allocation2 + $0x598] sm:$0xff] }
  0x48   :  { %402 = vmatprep.subr.mxu0 %v131_v48  ;;  %473 = vmatprep.subr.mxu1 %v133_v49  ;;  %v282_v10 = vld [vmem:[#allocation2 + $0x580] sm:$0xff]  ;;  %v284_v11 = vld [vmem:[#allocation2 + $0x590] sm:$0xff]  ;;  %v275_v12 = vld [vmem:[#allocation2 + $0x548] sm:$0xff] }
  0x49   :  { %403 = vmatpush1.msra.mxu0 %v130_v50  ;;  %474 = vmatpush1.msra.mxu1 %v132_v51  ;;  %v277_v13 = vld [vmem:[#allocation2 + $0x558] sm:$0xff]  ;;  %v274_v14 = vld [vmem:[#allocation2 + $0x540] sm:$0xff]  ;;  %v276_v15 = vld [vmem:[#allocation2 + $0x550] sm:$0xff] }
  0x4a   :  { %404 = vmatprep.subr.mxu0 %v123_v52  ;;  %475 = vmatprep.subr.mxu1 %v125_v53  ;;  %v267_v16 = vld [vmem:[#allocation2 + $0x508] sm:$0xff]  ;;  %v269_v17 = vld [vmem:[#allocation2 + $0x518] sm:$0xff]  ;;  %v266_v18 = vld [vmem:[#allocation2 + $0x500] sm:$0xff] }
  0x4b   :  { %405 = vmatpush1.msra.mxu0 %v122_v54  ;;  %476 = vmatpush1.msra.mxu1 %v124_v55  ;;  %v268_v19 = vld [vmem:[#allocation2 + $0x510] sm:$0xff]  ;;  %v259_v20 = vld [vmem:[#allocation2 + $0x4c8] sm:$0xff]  ;;  %v261_v21 = vld [vmem:[#allocation2 + $0x4d8] sm:$0xff] }
  0x4c   :  { %406 = vmatprep.subr.mxu0 %v115_v56  ;;  %477 = vmatprep.subr.mxu1 %v117_v57  ;;  %v258_v22 = vld [vmem:[#allocation2 + $0x4c0] sm:$0xff]  ;;  %v260_v23 = vld [vmem:[#allocation2 + $0x4d0] sm:$0xff]  ;;  %v251_v24 = vld [vmem:[#allocation2 + $0x488] sm:$0xff] }
  0x4d   :  { %407 = vmatpush1.msra.mxu0 %v114_v58  ;;  %478 = vmatpush1.msra.mxu1 %v116_v59  ;;  %v253_v25 = vld [vmem:[#allocation2 + $0x498] sm:$0xff]  ;;  %v250_v26 = vld [vmem:[#allocation2 + $0x480] sm:$0xff]  ;;  %v252_v27 = vld [vmem:[#allocation2 + $0x490] sm:$0xff] }
  0x4e   :  { %408 = vmatprep.subr.mxu0 %v107_v60  ;;  %479 = vmatprep.subr.mxu1 %v109_v61  ;;  %v2524_v28 = vld [vmem:[%s2802_s26] sm:$0xff]  ;;  %v243_v29 = vld [vmem:[#allocation2 + $0x448] sm:$0xff]  ;;  %v245_v30 = vld [vmem:[#allocation2 + $0x458] sm:$0xff] }
  0x4f   :  { %409 = vmatpush1.msra.mxu0 %v106_v62  ;;  %480 = vmatpush1.msra.mxu1 %v108_v63  ;;  %v242_v31 = vld [vmem:[#allocation2 + $0x440] sm:$0xff]  ;;  %v244_v32 = vld [vmem:[#allocation2 + $0x450] sm:$0xff]  ;;  %v235_v33 = vld [vmem:[#allocation2 + $0x408] sm:$0xff]  ;;  %v2528_v35 = vcombine.high %v2524_v28, %v2524_v28 }
  0x50   :  { %2035 = vmatprep.subr.msk.mxu0 %vm353_vm0, %v299_v0  ;;  %2038 = vmatprep.subr.msk.mxu1 %vm353_vm0, %v301_v1  ;;  %v237_v34 = vld [vmem:[#allocation2 + $0x418] sm:$0xff]  ;;  %v234_v36 = vld [vmem:[#allocation2 + $0x400] sm:$0xff]  ;;  %v236_v37 = vld [vmem:[#allocation2 + $0x410] sm:$0xff] }
  0x51   :  { %2036 = vmatpush2.msk.msra.mxu0 %vm353_vm0, %v298_v2  ;;  %2039 = vmatpush2.msk.msra.mxu1 %vm353_vm0, %v300_v3  ;;  %v231_v38 = vld [vmem:[#allocation2 + $0x3e8] sm:$0xff]  ;;  %v233_v39 = vld [vmem:[#allocation2 + $0x3f8] sm:$0xff]  ;;  %v230_v40 = vld [vmem:[#allocation2 + $0x3e0] sm:$0xff] }
  0x52   :  { %426 = vmatprep.subr.mxu0 %v291_v4  ;;  %497 = vmatprep.subr.mxu1 %v293_v5  ;;  %v232_v41 = vld [vmem:[#allocation2 + $0x3f0] sm:$0xff]  ;;  %v223_v42 = vld [vmem:[#allocation2 + $0x3a8] sm:$0xff]  ;;  %v225_v43 = vld [vmem:[#allocation2 + $0x3b8] sm:$0xff] }
  0x53   :  { %427 = vmatpush2.msra.mxu0 %v290_v6  ;;  %498 = vmatpush2.msra.mxu1 %v292_v7  ;;  %v222_v44 = vld [vmem:[#allocation2 + $0x3a0] sm:$0xff]  ;;  %v224_v45 = vld [vmem:[#allocation2 + $0x3b0] sm:$0xff]  ;;  %v215_v46 = vld [vmem:[#allocation2 + $0x368] sm:$0xff] }
  0x54   :  { %428 = vmatprep.subr.mxu0 %v283_v8  ;;  %499 = vmatprep.subr.mxu1 %v285_v9  ;;  %v217_v47 = vld [vmem:[#allocation2 + $0x378] sm:$0xff]  ;;  %v214_v48 = vld [vmem:[#allocation2 + $0x360] sm:$0xff]  ;;  %v216_v49 = vld [vmem:[#allocation2 + $0x370] sm:$0xff] }
  0x55   :  { %429 = vmatpush2.msra.mxu0 %v282_v10  ;;  %500 = vmatpush2.msra.mxu1 %v284_v11  ;;  %v207_v50 = vld [vmem:[#allocation2 + $0x328] sm:$0xff]  ;;  %v209_v51 = vld [vmem:[#allocation2 + $0x338] sm:$0xff]  ;;  %v206_v52 = vld [vmem:[#allocation2 + $0x320] sm:$0xff] }
  0x56   :  { %430 = vmatprep.subr.mxu0 %v275_v12  ;;  %501 = vmatprep.subr.mxu1 %v277_v13  ;;  %v208_v53 = vld [vmem:[#allocation2 + $0x330] sm:$0xff]  ;;  %v199_v54 = vld [vmem:[#allocation2 + $0x2e8] sm:$0xff]  ;;  %v201_v55 = vld [vmem:[#allocation2 + $0x2f8] sm:$0xff] }
  0x57   :  { %431 = vmatpush2.msra.mxu0 %v274_v14  ;;  %502 = vmatpush2.msra.mxu1 %v276_v15  ;;  %v198_v56 = vld [vmem:[#allocation2 + $0x2e0] sm:$0xff]  ;;  %v200_v57 = vld [vmem:[#allocation2 + $0x2f0] sm:$0xff]  ;;  %v191_v58 = vld [vmem:[#allocation2 + $0x2a8] sm:$0xff] }
  0x58   :  { %432 = vmatprep.subr.mxu0 %v267_v16  ;;  %503 = vmatprep.subr.mxu1 %v269_v17  ;;  %v193_v59 = vld [vmem:[#allocation2 + $0x2b8] sm:$0xff]  ;;  %v190_v60 = vld [vmem:[#allocation2 + $0x2a0] sm:$0xff]  ;;  %v192_v61 = vld [vmem:[#allocation2 + $0x2b0] sm:$0xff] }
  0x59   :  { %433 = vmatpush2.msra.mxu0 %v266_v18  ;;  %504 = vmatpush2.msra.mxu1 %v268_v19  ;;  %v183_v62 = vld [vmem:[#allocation2 + $0x268] sm:$0xff]  ;;  %v185_v63 = vld [vmem:[#allocation2 + $0x278] sm:$0xff]  ;;  %v182_v0 = vld [vmem:[#allocation2 + $0x260] sm:$0xff] }
  0x5a   :  { %434 = vmatprep.subr.mxu0 %v259_v20  ;;  %505 = vmatprep.subr.mxu1 %v261_v21  ;;  %v184_v1 = vld [vmem:[#allocation2 + $0x270] sm:$0xff]  ;;  %v175_v2 = vld [vmem:[#allocation2 + $0x228] sm:$0xff]  ;;  %v177_v3 = vld [vmem:[#allocation2 + $0x238] sm:$0xff] }
  0x5b   :  { %435 = vmatpush2.msra.mxu0 %v258_v22  ;;  %506 = vmatpush2.msra.mxu1 %v260_v23  ;;  %v174_v4 = vld [vmem:[#allocation2 + $0x220] sm:$0xff]  ;;  %v176_v5 = vld [vmem:[#allocation2 + $0x230] sm:$0xff]  ;;  %v167_v6 = vld [vmem:[#allocation2 + $0x1e8] sm:$0xff] }
  0x5c   :  { %436 = vmatprep.subr.mxu0 %v251_v24  ;;  %507 = vmatprep.subr.mxu1 %v253_v25  ;;  %v169_v7 = vld [vmem:[#allocation2 + $0x1f8] sm:$0xff]  ;;  %v166_v8 = vld [vmem:[#allocation2 + $0x1e0] sm:$0xff]  ;;  %v168_v9 = vld [vmem:[#allocation2 + $0x1f0] sm:$0xff] }
  0x5d   :  { %437 = vmatpush2.msra.mxu0 %v250_v26  ;;  %508 = vmatpush2.msra.mxu1 %v252_v27  ;;  %v159_v10 = vld [vmem:[#allocation2 + $0x1a8] sm:$0xff]  ;;  %v161_v11 = vld [vmem:[#allocation2 + $0x1b8] sm:$0xff]  ;;  %v158_v12 = vld [vmem:[#allocation2 + $0x1a0] sm:$0xff] }
  0x5e   :  { %438 = vmatprep.subr.mxu0 %v243_v29  ;;  %509 = vmatprep.subr.mxu1 %v245_v30  ;;  %v160_v13 = vld [vmem:[#allocation2 + $0x1b0] sm:$0xff]  ;;  %v151_v14 = vld [vmem:[#allocation2 + $0x168] sm:$0xff]  ;;  %v153_v15 = vld [vmem:[#allocation2 + $0x178] sm:$0xff] }
  0x5f   :  { %439 = vmatpush2.msra.mxu0 %v242_v31  ;;  %510 = vmatpush2.msra.mxu1 %v244_v32  ;;  %v150_v16 = vld [vmem:[#allocation2 + $0x160] sm:$0xff]  ;;  %v152_v17 = vld [vmem:[#allocation2 + $0x170] sm:$0xff]  ;;  %v143_v18 = vld [vmem:[#allocation2 + $0x128] sm:$0xff] }
  0x60   :  { %440 = vmatprep.subr.mxu0 %v235_v33  ;;  %511 = vmatprep.subr.mxu1 %v237_v34  ;;  %v145_v19 = vld [vmem:[#allocation2 + $0x138] sm:$0xff]  ;;  %v142_v20 = vld [vmem:[#allocation2 + $0x120] sm:$0xff]  ;;  %v144_v21 = vld [vmem:[#allocation2 + $0x130] sm:$0xff] }
  0x61   :  { %441 = vmatpush2.msra.mxu0 %v234_v36  ;;  %2037 = vmatprep.mubr.msk.f32.mxu0 %vm350_vm1, %v2528_v35  ;;  %v135_v22 = vld [vmem:[#allocation2 + $0xe8] sm:$0xff]  ;;  %v137_v23 = vld [vmem:[#allocation2 + $0xf8] sm:$0xff]  ;;  %v134_v24 = vld [vmem:[#allocation2 + $0xe0] sm:$0xff] }
  0x62   :  { %512 = vmatpush2.msra.mxu1 %v236_v37  ;;  %2040 = vmatprep.mubr.msk.f32.mxu1 %vm350_vm1, %v2528_v35  ;;  %v136_v25 = vld [vmem:[#allocation2 + $0xf0] sm:$0xff]  ;;  %v127_v26 = vld [vmem:[#allocation2 + $0xa8] sm:$0xff]  ;;  %v129_v27 = vld [vmem:[#allocation2 + $0xb8] sm:$0xff] }
  0x63   :  { %443 = vmatmul.mubr.f32.vlgmr.msra.gmra.mxu0 %v2524_v28  ;;  %514 = vmatmul.mubr.f32.vlgmr.msra.gmra.mxu1 %v2524_v28  ;;  %v126_v29 = vld [vmem:[#allocation2 + $0xa0] sm:$0xff]  ;;  %v128_v30 = vld [vmem:[#allocation2 + $0xb0] sm:$0xff]  ;;  %v119_v31 = vld [vmem:[#allocation2 + $0x68] sm:$0xff] }
  0x64   :  { %520 = vmatprep.subr.mxu0 %v231_v38  ;;  %591 = vmatprep.subr.mxu1 %v233_v39  ;;  %v121_v32 = vld [vmem:[#allocation2 + $0x78] sm:$0xff]  ;;  %v118_v33 = vld [vmem:[#allocation2 + $0x60] sm:$0xff]  ;;  %v120_v34 = vld [vmem:[#allocation2 + $0x70] sm:$0xff] }
  0x65   :  { %521 = vmatpush1.msra.mxu0 %v230_v40  ;;  %592 = vmatpush1.msra.mxu1 %v232_v41  ;;  %v111_v36 = vld [vmem:[#allocation2 + $0x28] sm:$0xff]  ;;  %v113_v37 = vld [vmem:[#allocation2 + $0x38] sm:$0xff]  ;;  %v110_v38 = vld [vmem:[#allocation2 + $0x20] sm:$0xff] }
  0x66   :  { %522 = vmatprep.subr.mxu0 %v223_v42  ;;  %593 = vmatprep.subr.mxu1 %v225_v43  ;;  %v112_v39 = vld [vmem:[#allocation2 + $0x30] sm:$0xff]  ;;  %v303_v40 = vld [vmem:[#allocation2 + $0x628] sm:$0xf]  ;;  %v305_v41 = vld [vmem:[#allocation2 + $0x638] sm:$0xf] }
  0x67   :  { %523 = vmatpush1.msra.mxu0 %v222_v44  ;;  %594 = vmatpush1.msra.mxu1 %v224_v45  ;;  %v302_v42 = vld [vmem:[#allocation2 + $0x620] sm:$0xf]  ;;  %v304_v43 = vld [vmem:[#allocation2 + $0x630] sm:$0xf]  ;;  %v295_v44 = vld [vmem:[#allocation2 + $0x5e8] sm:$0xff] }
  0x68   :  { %524 = vmatprep.subr.mxu0 %v215_v46  ;;  %595 = vmatprep.subr.mxu1 %v217_v47  ;;  %v297_v45 = vld [vmem:[#allocation2 + $0x5f8] sm:$0xff]  ;;  %v294_v46 = vld [vmem:[#allocation2 + $0x5e0] sm:$0xff]  ;;  %v296_v47 = vld [vmem:[#allocation2 + $0x5f0] sm:$0xff] }
  0x69   :  { %525 = vmatpush1.msra.mxu0 %v214_v48  ;;  %596 = vmatpush1.msra.mxu1 %v216_v49  ;;  %v287_v48 = vld [vmem:[#allocation2 + $0x5a8] sm:$0xff]  ;;  %v289_v49 = vld [vmem:[#allocation2 + $0x5b8] sm:$0xff] }
  0x6a   :  { %526 = vmatprep.subr.mxu0 %v207_v50  ;;  %597 = vmatprep.subr.mxu1 %v209_v51  ;;  %v286_v50 = vld [vmem:[#allocation2 + $0x5a0] sm:$0xff]  ;;  %v288_v51 = vld [vmem:[#allocation2 + $0x5b0] sm:$0xff] }
  0x6b   :  { %527 = vmatpush1.msra.mxu0 %v206_v52  ;;  %598 = vmatpush1.msra.mxu1 %v208_v53  ;;  %v279_v52 = vld [vmem:[#allocation2 + $0x568] sm:$0xff]  ;;  %v281_v53 = vld [vmem:[#allocation2 + $0x578] sm:$0xff] }
  0x6c   :  { %528 = vmatprep.subr.mxu0 %v199_v54  ;;  %599 = vmatprep.subr.mxu1 %v201_v55  ;;  %v278_v54 = vld [vmem:[#allocation2 + $0x560] sm:$0xff]  ;;  %v280_v55 = vld [vmem:[#allocation2 + $0x570] sm:$0xff] }
  0x6d   :  { %529 = vmatpush1.msra.mxu0 %v198_v56  ;;  %600 = vmatpush1.msra.mxu1 %v200_v57  ;;  %v271_v56 = vld [vmem:[#allocation2 + $0x528] sm:$0xff]  ;;  %v273_v57 = vld [vmem:[#allocation2 + $0x538] sm:$0xff] }
  0x6e   :  { %530 = vmatprep.subr.mxu0 %v191_v58  ;;  %601 = vmatprep.subr.mxu1 %v193_v59  ;;  %v270_v58 = vld [vmem:[#allocation2 + $0x520] sm:$0xff]  ;;  %v272_v59 = vld [vmem:[#allocation2 + $0x530] sm:$0xff] }
  0x6f   :  { %531 = vmatpush1.msra.mxu0 %v190_v60  ;;  %602 = vmatpush1.msra.mxu1 %v192_v61  ;;  %v263_v60 = vld [vmem:[#allocation2 + $0x4e8] sm:$0xff]  ;;  %v265_v61 = vld [vmem:[#allocation2 + $0x4f8] sm:$0xff] }
  0x70   :  { %532 = vmatprep.subr.mxu0 %v183_v62  ;;  %603 = vmatprep.subr.mxu1 %v185_v63  ;;  %v262_v62 = vld [vmem:[#allocation2 + $0x4e0] sm:$0xff]  ;;  %v264_v63 = vld [vmem:[#allocation2 + $0x4f0] sm:$0xff] }
  0x71   :  { %533 = vmatpush1.msra.mxu0 %v182_v0  ;;  %604 = vmatpush1.msra.mxu1 %v184_v1  ;;  %v255_v0 = vld [vmem:[#allocation2 + $0x4a8] sm:$0xff]  ;;  %v257_v1 = vld [vmem:[#allocation2 + $0x4b8] sm:$0xff] }
  0x72   :  { %534 = vmatprep.subr.mxu0 %v175_v2  ;;  %605 = vmatprep.subr.mxu1 %v177_v3  ;;  %v254_v2 = vld [vmem:[#allocation2 + $0x4a0] sm:$0xff]  ;;  %v256_v3 = vld [vmem:[#allocation2 + $0x4b0] sm:$0xff] }
  0x73   :  { %535 = vmatpush1.msra.mxu0 %v174_v4  ;;  %606 = vmatpush1.msra.mxu1 %v176_v5  ;;  %v247_v4 = vld [vmem:[#allocation2 + $0x468] sm:$0xff]  ;;  %v249_v5 = vld [vmem:[#allocation2 + $0x478] sm:$0xff] }
  0x74   :  { %536 = vmatprep.subr.mxu0 %v167_v6  ;;  %607 = vmatprep.subr.mxu1 %v169_v7  ;;  %v246_v6 = vld [vmem:[#allocation2 + $0x460] sm:$0xff]  ;;  %v248_v7 = vld [vmem:[#allocation2 + $0x470] sm:$0xff] }
  0x75   :  { %537 = vmatpush1.msra.mxu0 %v166_v8  ;;  %608 = vmatpush1.msra.mxu1 %v168_v9  ;;  %v239_v8 = vld [vmem:[#allocation2 + $0x428] sm:$0xff]  ;;  %v241_v9 = vld [vmem:[#allocation2 + $0x438] sm:$0xff] }
  0x76   :  { %538 = vmatprep.subr.mxu0 %v159_v10  ;;  %609 = vmatprep.subr.mxu1 %v161_v11  ;;  %v238_v10 = vld [vmem:[#allocation2 + $0x420] sm:$0xff]  ;;  %v240_v11 = vld [vmem:[#allocation2 + $0x430] sm:$0xff] }
  0x77   :  { %539 = vmatpush1.msra.mxu0 %v158_v12  ;;  %610 = vmatpush1.msra.mxu1 %v160_v13  ;;  %v701_v12 = vld [vmem:[#allocation5 + $0xf8] sm:$0xff] }
  0x78   :  { %540 = vmatprep.subr.mxu0 %v151_v14  ;;  %611 = vmatprep.subr.mxu1 %v153_v15  ;;  %v685_v13 = vld [vmem:[#allocation5 + $0x78] sm:$0xff]  ;;  %v700_v14 = vld [vmem:[#allocation5 + $0xf0] sm:$0xff] }
  0x79   :  { %541 = vmatpush1.msra.mxu0 %v150_v16  ;;  %612 = vmatpush1.msra.mxu1 %v152_v17  ;;  %v684_v15 = vld [vmem:[#allocation5 + $0x70] sm:$0xff]  ;;  %v699_v16 = vld [vmem:[#allocation5 + $0xe8] sm:$0xff] }
  0x7a   :  { %542 = vmatprep.subr.mxu0 %v143_v18  ;;  %613 = vmatprep.subr.mxu1 %v145_v19  ;;  %v683_v17 = vld [vmem:[#allocation5 + $0x68] sm:$0xff]  ;;  %v698_v18 = vld [vmem:[#allocation5 + $0xe0] sm:$0xff]  ;;  %v681_v19 = vld [vmem:[#allocation5 + $0x58] sm:$0xff] }
  0x7b   :  { %543 = vmatpush1.msra.mxu0 %v142_v20  ;;  %614 = vmatpush1.msra.mxu1 %v144_v21  ;;  %v696_v20 = vld [vmem:[#allocation5 + $0xd0] sm:$0xff] }
  0x7c   :  { %544 = vmatprep.subr.mxu0 %v135_v22  ;;  %615 = vmatprep.subr.mxu1 %v137_v23  ;;  %v680_v21 = vld [vmem:[#allocation5 + $0x50] sm:$0xff]  ;;  %v695_v22 = vld [vmem:[#allocation5 + $0xc8] sm:$0xff] }
  0x7d   :  { %545 = vmatpush1.msra.mxu0 %v134_v24  ;;  %616 = vmatpush1.msra.mxu1 %v136_v25  ;;  %v679_v23 = vld [vmem:[#allocation5 + $0x48] sm:$0xff]  ;;  %v694_v24 = vld [vmem:[#allocation5 + $0xc0] sm:$0xff] }
  0x7e   :  { %546 = vmatprep.subr.mxu0 %v127_v26  ;;  %617 = vmatprep.subr.mxu1 %v129_v27  ;;  %v678_v25 = vld [vmem:[#allocation5 + $0x40] sm:$0xff]  ;;  %v693_v26 = vld [vmem:[#allocation5 + $0xb8] sm:$0xff] }
  0x7f   :  { %547 = vmatpush1.msra.mxu0 %v126_v29  ;;  %618 = vmatpush1.msra.mxu1 %v128_v30  ;;  %v677_v27 = vld [vmem:[#allocation5 + $0x38] sm:$0xff]  ;;  %v692_v29 = vld [vmem:[#allocation5 + $0xb0] sm:$0xff] }
  0x80   :  { %548 = vmatprep.subr.mxu0 %v119_v31  ;;  %619 = vmatprep.subr.mxu1 %v121_v32  ;;  %v676_v30 = vld [vmem:[#allocation5 + $0x30] sm:$0xff]  ;;  %v691_v31 = vld [vmem:[#allocation5 + $0xa8] sm:$0xff] }
  0x81   :  { %549 = vmatpush1.msra.mxu0 %v118_v33  ;;  %620 = vmatpush1.msra.mxu1 %v120_v34  ;;  %v675_v32 = vld [vmem:[#allocation5 + $0x28] sm:$0xff]  ;;  %v690_v33 = vld [vmem:[#allocation5 + $0xa0] sm:$0xff] }
  0x82   :  { %550 = vmatprep.subr.mxu0 %v111_v36  ;;  %621 = vmatprep.subr.mxu1 %v113_v37  ;;  %v674_v34 = vld [vmem:[#allocation5 + $0x20] sm:$0xff]  ;;  %v689_v36 = vld [vmem:[#allocation5 + $0x98] sm:$0xff] }
  0x83   :  { %551 = vmatpush1.msra.mxu0 %v110_v38  ;;  %622 = vmatpush1.msra.mxu1 %v112_v39  ;;  %v673_v37 = vld [vmem:[#allocation5 + $0x18] sm:$0xff]  ;;  %v688_v38 = vld [vmem:[#allocation5 + $0x90] sm:$0xff] }
  0x84   :  { %2041 = vmatprep.subr.msk.mxu0 %vm353_vm0, %v303_v40  ;;  %2044 = vmatprep.subr.msk.mxu1 %vm353_vm0, %v305_v41  ;;  %v672_v39 = vld [vmem:[#allocation5 + $0x10] sm:$0xff]  ;;  %v687_v40 = vld [vmem:[#allocation5 + $0x88] sm:$0xff] }
  0x85   :  { %2042 = vmatpush2.msk.msra.mxu0 %vm353_vm0, %v302_v42  ;;  %2045 = vmatpush2.msk.msra.mxu1 %vm353_vm0, %v304_v43  ;;  %v671_v41 = vld [vmem:[#allocation5 + $0x8] sm:$0xff]  ;;  %v686_v42 = vld [vmem:[#allocation5 + $0x80] sm:$0xff] }
  0x86   :  { %568 = vmatprep.subr.mxu0 %v295_v44  ;;  %639 = vmatprep.subr.mxu1 %v297_v45  ;;  %v670_v43 = vld [vmem:[#allocation5] sm:$0xff]  ;;  %v308_v44 = vlaneseq }
  0x87   :  { %569 = vmatpush2.msra.mxu0 %v294_v46  ;;  %640 = vmatpush2.msra.mxu1 %v296_v47 }
  0x88   :  { %570 = vmatprep.subr.mxu0 %v287_v48  ;;  %641 = vmatprep.subr.mxu1 %v289_v49  ;;  %v2546_v45 = vshrl.u32 %v308_v44, 7  ;;  %v306_v48 = vld [vmem:[%s2803_s4] sm:$0xff] }
  0x89   :  { %571 = vmatpush2.msra.mxu0 %v286_v50  ;;  %642 = vmatpush2.msra.mxu1 %v288_v51 }
  0x8a   :  { %572 = vmatprep.subr.mxu0 %v279_v52  ;;  %643 = vmatprep.subr.mxu1 %v281_v53  ;;  %v2549_v46 = vsub.s32 0, %v2546_v45  ;;  %v318_v47 = vsub.s32 2, %v2546_v45  ;;  %v314_v49 = vsub.s32 1, %v2546_v45  ;;  %v322_v50 = vsub.s32 3, %v2546_v45 }
  0x8b   :  { %573 = vmatpush2.msra.mxu0 %v278_v54  ;;  %644 = vmatpush2.msra.mxu1 %v280_v55  ;;  %v326_v51 = vsub.s32 4, %v2546_v45  ;;  %v334_v52 = vsub.s32 6, %v2546_v45  ;;  %vm1206_vm4 = vcmp.lt.s32.totalorder %v2546_v45, 2 }
  0x8c   :  { %574 = vmatprep.subr.mxu0 %v271_v56  ;;  %645 = vmatprep.subr.mxu1 %v273_v57  ;;  %v311_v55 = vrot.slane %v306_v48, %v2549_v46  ;;  %v319_v56 = vrot.slane %v306_v48, %v318_v47  ;;  %v330_v57 = vsub.s32 5, %v2546_v45 }
  0x8d   :  { %575 = vmatpush2.msra.mxu0 %v270_v58  ;;  %646 = vmatpush2.msra.mxu1 %v272_v59  ;;  %v338_v58 = vsub.s32 7, %v2546_v45  ;;  %v315_v59 = vrot.slane %v306_v48, %v314_v49  ;;  %v1640_v45 = vld [vmem:[%s2784_s11 + $0x8] sm:$0xff] }
  0x8e   :  { %576 = vmatprep.subr.mxu0 %v263_v60  ;;  %647 = vmatprep.subr.mxu1 %v265_v61  ;;  %v323_v60 = vrot.slane %v306_v48, %v322_v50  ;;  %v327_v61 = vrot.slane %v306_v48, %v326_v51 }
  0x8f   :  { %577 = vmatpush2.msra.mxu0 %v262_v62  ;;  %648 = vmatpush2.msra.mxu1 %v264_v63  ;;  %v335_v62 = vrot.slane %v306_v48, %v334_v52 }
  0x90   :  { %578 = vmatprep.subr.mxu0 %v255_v0  ;;  %649 = vmatprep.subr.mxu1 %v257_v1 }
  0x91   :  { %579 = vmatpush2.msra.mxu0 %v254_v2  ;;  %650 = vmatpush2.msra.mxu1 %v256_v3  ;;  %v331_v3 = vrot.slane %v306_v48, %v330_v57 }
  0x92   :  { %580 = vmatprep.subr.mxu0 %v247_v4  ;;  %651 = vmatprep.subr.mxu1 %v249_v5  ;;  %v339_v4 = vrot.slane %v306_v48, %v338_v58 }
  0x93   :  { %581 = vmatpush2.msra.mxu0 %v246_v6  ;;  %652 = vmatpush2.msra.mxu1 %v248_v7 }
  0x94   :  { %582 = vmatprep.subr.mxu0 %v239_v8  ;;  %653 = vmatprep.subr.mxu1 %v241_v9 }
  0x95   :  { %583 = vmatpush2.msra.mxu0 %v238_v10  ;;  %2043 = vmatprep.mubr.msk.f32.mxu0 %vm350_vm1, %v2528_v35 }
  0x96   :  { %654 = vmatpush2.msra.mxu1 %v240_v11  ;;  %2046 = vmatprep.mubr.msk.f32.mxu1 %vm350_vm1, %v2528_v35  ;;  %v682_v35 = vld [vmem:[#allocation5 + $0x60] sm:$0xff] }
  0x97   :  { %585 = vmatmul.mubr.f32.vlgmr.msra.gmra.mxu0 %v2524_v28  ;;  %656 = vmatmul.mubr.f32.vlgmr.msra.gmra.mxu1 %v2524_v28  ;;  %v697_v28 = vld [vmem:[#allocation5 + $0xd8] sm:$0xff] }
  0x98   :  { %2069 = vmatprep.subr.mxu0 %v701_v12  ;;  %2104 = vmatprep.subr.mxu1 %v701_v12 }
  0x99   :  { %2070 = vmatpush3.msra.mxu0 %v685_v13  ;;  %2105 = vmatpush3.msra.mxu1 %v685_v13 }
  0x9a   :  { %2071 = vmatprep.subr.mxu0 %v700_v14  ;;  %2106 = vmatprep.subr.mxu1 %v700_v14 }
  0x9b   :  { %2072 = vmatpush3.msra.mxu0 %v684_v15  ;;  %2107 = vmatpush3.msra.mxu1 %v684_v15 }
  0x9c   :  { %2073 = vmatprep.subr.mxu0 %v699_v16  ;;  %2108 = vmatprep.subr.mxu1 %v699_v16 }
  0x9d   :  { %2074 = vmatpush3.msra.mxu0 %v683_v17  ;;  %2109 = vmatpush3.msra.mxu1 %v683_v17 }
  0x9e   :  { %2075 = vmatprep.subr.mxu0 %v698_v18  ;;  %2110 = vmatprep.subr.mxu1 %v698_v18 }
  0x9f   :  { %2076 = vmatpush3.msra.mxu0 %v682_v35  ;;  %2111 = vmatpush3.msra.mxu1 %v682_v35 }
  0xa0   :  { %2077 = vmatprep.subr.mxu0 %v697_v28  ;;  %2112 = vmatprep.subr.mxu1 %v697_v28 }
  0xa1   :  { %2078 = vmatpush3.msra.mxu0 %v681_v19  ;;  %2113 = vmatpush3.msra.mxu1 %v681_v19 }
  0xa2   :  { %2079 = vmatprep.subr.mxu0 %v696_v20  ;;  %2114 = vmatprep.subr.mxu1 %v696_v20 }
  0xa3   :  { %2080 = vmatpush3.msra.mxu0 %v680_v21  ;;  %2115 = vmatpush3.msra.mxu1 %v680_v21 }
  0xa4   :  { %2081 = vmatprep.subr.mxu0 %v695_v22  ;;  %2116 = vmatprep.subr.mxu1 %v695_v22 }
  0xa5   :  { %2082 = vmatpush3.msra.mxu0 %v679_v23  ;;  %2117 = vmatpush3.msra.mxu1 %v679_v23  ;;  %v2581_v23 = vld [vmem:[%s2804_s0] sm:$0xff] }
  0xa6   :  { %2083 = vmatprep.subr.mxu0 %v694_v24  ;;  %2118 = vmatprep.subr.mxu1 %v694_v24  ;;  %v2585_v24 = vcombine.high %v2581_v23, %v2581_v23 }
  0xa7   :  { %2084 = vmatpush3.msra.mxu0 %v678_v25  ;;  %2119 = vmatpush3.msra.mxu1 %v678_v25  ;;  %v2398_v25 = vmov 0.0  }
  0xa8   :  { %2085 = vmatprep.subr.mxu0 %v693_v26  ;;  %2120 = vmatprep.subr.mxu1 %v693_v26  ;;  %v1310_v26 = vld [vmem:[#allocation7 + $0x1e8] sm:$0xff] }
  0xa9   :  { %2086 = vmatpush3.msra.mxu0 %v677_v27  ;;  %2121 = vmatpush3.msra.mxu1 %v677_v27 }
  0xaa   :  { %2087 = vmatprep.subr.mxu0 %v692_v29  ;;  %2122 = vmatprep.subr.mxu1 %v692_v29 }
  0xab   :  { %2088 = vmatpush3.msra.mxu0 %v676_v30  ;;  %2123 = vmatpush3.msra.mxu1 %v676_v30 }
  0xac   :  { %2089 = vmatprep.subr.mxu0 %v691_v31  ;;  %2124 = vmatprep.subr.mxu1 %v691_v31 }
  0xad   :  { %2090 = vmatpush3.msra.mxu0 %v675_v32  ;;  %2125 = vmatpush3.msra.mxu1 %v675_v32 }
  0xae   :  { %2091 = vmatprep.subr.mxu0 %v690_v33  ;;  %2126 = vmatprep.subr.mxu1 %v690_v33 }
  0xaf   :  { %2092 = vmatpush3.msra.mxu0 %v674_v34  ;;  %2127 = vmatpush3.msra.mxu1 %v674_v34 }
  0xb0   :  { %2093 = vmatprep.subr.mxu0 %v689_v36  ;;  %2128 = vmatprep.subr.mxu1 %v689_v36 }
  0xb1   :  { %2094 = vmatpush3.msra.mxu0 %v673_v37  ;;  %2129 = vmatpush3.msra.mxu1 %v673_v37 }
  0xb2   :  { %2095 = vmatprep.subr.mxu0 %v688_v38  ;;  %2130 = vmatprep.subr.mxu1 %v688_v38 }
  0xb3   :  { %2096 = vmatpush3.msra.mxu0 %v672_v39  ;;  %2131 = vmatpush3.msra.mxu1 %v672_v39 }
  0xb4   :  { %2097 = vmatprep.subr.mxu0 %v687_v40  ;;  %2132 = vmatprep.subr.mxu1 %v687_v40 }
  0xb5   :  { %2098 = vmatpush3.msra.mxu0 %v671_v41  ;;  %2133 = vmatpush3.msra.mxu1 %v671_v41 }
  0xb6   :  { %2099 = vmatprep.subr.mxu0 %v686_v42  ;;  %2134 = vmatprep.subr.mxu1 %v686_v42 }
  0xb7   :  { %2100 = vmatpush3.msra.mxu0 %v670_v43  ;;  %2135 = vmatpush3.msra.mxu1 %v670_v43 }
  0xb8   :  { %2047 = vmatprep.subr.msk.mxu1 %vm353_vm0, %v2585_v24  ;;  %2053 = vmatprep.subr.msk.mxu0 %vm353_vm0, %v2585_v24 }
 0x123   :  { %v444_v53 = vpop.f32.mrf.mxu0  ;;  %v515_v54 = vpop.f32.mrf.mxu1 }
 0x124   :  { %v445_v1 = vadd.f32 %v444_v53, %v311_v55  ;;  %v516_v2 = vadd.f32 %v515_v54, %v319_v56 }
 0x125   :  { %v446_v63 = vpop.f32.mrf.mxu0  ;;  %v517_v0 = vpop.f32.mrf.mxu1 }
 0x126   :  { %v447_v7 = vadd.f32 %v446_v63, %v315_v59  ;;  %v518_v8 = vadd.f32 %v517_v0, %v323_v60  ;;  %v662_v13 = vmax.f32 %v445_v1, %v516_v2 }
 0x128   :  { %v663_v17 = vmax.f32 %v447_v7, %v518_v8 }
 0x157   :  { %v586_v5 = vpop.f32.mrf.mxu0  ;;  %v657_v6 = vpop.f32.mrf.mxu1 }
 0x158   :  { %v587_v9 = vadd.f32 %v586_v5, %v327_v61  ;;  %v658_v10 = vadd.f32 %v657_v6, %v335_v62 }
 0x159   :  { %v588_v11 = vpop.f32.mrf.mxu0  ;;  %v659_v12 = vpop.f32.mrf.mxu1 }
 0x15a   :  { %v664_v14 = vmax.f32 %v587_v9, %v658_v10  ;;  %v589_v15 = vadd.f32 %v588_v11, %v331_v3  ;;  %v660_v16 = vadd.f32 %v659_v12, %v339_v4 }
 0x15c   :  { %v666_v18 = vmax.f32 %v662_v13, %v664_v14  ;;  %v665_v35 = vmax.f32 %v589_v15, %v660_v16  ;;  %v864_v16 = vld [vmem:[%s2778_s5] sm:$0x1] }
 0x15e   :  { %v667_v28 = vmax.f32 %v663_v17, %v665_v35  ;;  %v2568_v19 = vmax.f32 %v666_v18, 0.0 }
 0x160   :  { %v2570_v20 = vmax.f32 %v667_v28, 0.0  ;;  %v772_v22 = vmul.f32 %v2568_v19, %v2568_v19  ;;  %v868_v28 = vld [vmem:[%s2779_s6] sm:$0x1] }
 0x162   :  { %766 = vmatprep.mubr.f32.mxu0 %v2570_v20  ;;  %v773_v21 = vmul.f32 %v2570_v20, %v2570_v20 }
 0x163   :  { %767 = vmatmul.mubr.f32.vlgmr.msra.gmra.mxu0 %v2568_v19 }
 0x164   :  { %838 = vmatprep.mubr.f32.mxu1 %v773_v21  ;;  %1123 = vmatprep.mubr.f32.mxu0 %v2398_v25 }
 0x165   :  { %839 = vmatmul.mubr.f32.vlgmr.msra.gmra.mxu1 %v772_v22  ;;  %2054 = vmatpush1.msk.msra.mxu0 %vm353_vm0, %v2581_v23 }
 0x166   :  { %946 = vmatprep.mubr.f32.mxu1 %v2398_v25  ;;  %2048 = vmatpush1.msk.msra.mxu1 %vm353_vm0, %v2581_v23 }
 0x167   :  { %2050 = vmatprep.subr.msk.mxu1 %vm353_vm0, %v2585_v24  ;;  %1399 = vmatprep.subr.mxu0 %v1310_v26  ;;  %v1309_v26 = vld [vmem:[#allocation7 + $0x1e0] sm:$0xff] }
 0x223   :  { %v2101_v27 = vpop.f32.mrf.mxu0 }
 0x225   :  { %v2102_v29 = vpop.f32.mrf.mxu0  ;;  %v2136_v30 = vpop.f32.mrf.mxu1 }
 0x226   :  { %v2103_v31 = vadd.f32 %v2102_v29, %v2101_v27  ;;  %v1306_v27 = vld [vmem:[#allocation7 + $0x1c8] sm:$0xff] }
 0x227   :  { %v2137_v32 = vpop.f32.mrf.mxu1 }
 0x228   :  { %v845_v33 = vsel %vm844_vm2, %v2103_v31, 0.0  ;;  %v1028_v34 = vrot.slane %v2103_v31, 2  ;;  %v2138_v36 = vadd.f32 %v2137_v32, %v2136_v30  ;;  %v1312_v31 = vld [vmem:[#allocation7 + $0x1f8] sm:$0xff]  ;;  %v1305_v32 = vld [vmem:[#allocation7 + $0x1c0] sm:$0xff] }
 0x229   :  { %v846_v37 = vrot.slane %v845_v33, 4 }
 0x22a   :  { %v1030_v38 = vsel %vm844_vm2, %v1028_v34, 0.0  ;;  %v854_v39 = vsel %vm844_vm2, %v2138_v36, 0.0  ;;  %v1039_v40 = vrot.slane %v2138_v36, 2  ;;  %v1301_v34 = vld [vmem:[#allocation7 + $0x1a0] sm:$0xff] }
 0x22b   :  { %v847_v41 = vadd.f32 %v846_v37, %v845_v33  ;;  %v1031_v42 = vrot.slane %v1030_v38, 4  ;;  %v855_v43 = vrot.slane %v854_v39, 4  ;;  %v1302_v33 = vld [vmem:[#allocation7 + $0x1a8] sm:$0xff]  ;;  %v1311_v37 = vld [vmem:[#allocation7 + $0x1f0] sm:$0xff] }
 0x22c   :  { %v1041_v44 = vsel %vm844_vm2, %v1039_v40, 0.0  ;;  %v1307_v40 = vld [vmem:[#allocation7 + $0x1d0] sm:$0xff] }
 0x22d   :  { %v848_v48 = vrot.slane %v847_v41, 2  ;;  %v1032_v51 = vadd.f32 %v1031_v42, %v1030_v38  ;;  %v856_v52 = vadd.f32 %v855_v43, %v854_v39  ;;  %v1042_v53 = vrot.slane %v1041_v44, 4  ;;  %v1308_v38 = vld [vmem:[#allocation7 + $0x1d8] sm:$0xff]  ;;  %v1297_v39 = vld [vmem:[#allocation7 + $0x180] sm:$0xff]  ;;  %v1303_v43 = vld [vmem:[#allocation7 + $0x1b0] sm:$0xff] }
 0x22e   :  { %v1304_v42 = vld [vmem:[#allocation7 + $0x1b8] sm:$0xff] }
 0x22f   :  { %v849_v54 = vadd.f32 %v848_v48, %v847_v41  ;;  %v1033_v55 = vrot.slane %v1032_v51, 2  ;;  %v857_v56 = vrot.slane %v856_v52, 2  ;;  %v1043_v57 = vadd.f32 %v1042_v53, %v1041_v44  ;;  %v1294_v41 = vld [vmem:[#allocation7 + $0x168] sm:$0xff]  ;;  %v1300_v48 = vld [vmem:[#allocation7 + $0x198] sm:$0xff] }
 0x230   :  { %v1290_v44 = vld [vmem:[#allocation7 + $0x148] sm:$0xff] }
 0x231   :  { %v850_v58 = vrot.slane %v849_v54, 1  ;;  %v1034_v59 = vadd.f32 %v1033_v55, %v1032_v51  ;;  %v858_v60 = vadd.f32 %v857_v56, %v856_v52  ;;  %v1044_v61 = vrot.slane %v1043_v57, 2  ;;  %v1289_v51 = vld [vmem:[#allocation7 + $0x140] sm:$0xff]  ;;  %v1299_v52 = vld [vmem:[#allocation7 + $0x190] sm:$0xff]  ;;  %v1286_v53 = vld [vmem:[#allocation7 + $0x128] sm:$0xff] }
 0x232   :  { %v1285_v55 = vld [vmem:[#allocation7 + $0x120] sm:$0xff]  ;;  %v1295_v56 = vld [vmem:[#allocation7 + $0x170] sm:$0xff] }
 0x233   :  { %v851_v62 = vadd.f32 %v850_v58, %v849_v54  ;;  %v1035_v63 = vrot.slane %v1034_v59, 1  ;;  %v859_v0 = vrot.slane %v858_v60, 1  ;;  %v1045_v1 = vadd.f32 %v1044_v61, %v1043_v57  ;;  %v1296_v54 = vld [vmem:[#allocation7 + $0x178] sm:$0xff]  ;;  %v1282_v57 = vld [vmem:[#allocation7 + $0x108] sm:$0xff] }
 0x234   :  { %v1292_v58 = vld [vmem:[#allocation7 + $0x158] sm:$0xff]  ;;  %v1278_v61 = vld [vmem:[#allocation7 + $0xe8] sm:$0xff] }
 0x235   :  { %v853_v2 = vmul.f32 0.010204081, %v851_v62  ;;  %v1036_v3 = vadd.f32 %v1035_v63, %v1034_v59  ;;  %v860_v4 = vadd.f32 %v859_v0, %v858_v60  ;;  %v1046_v5 = vrot.slane %v1045_v1, 1  ;;  %v1281_v59 = vld [vmem:[#allocation7 + $0x100] sm:$0xff]  ;;  %v1291_v60 = vld [vmem:[#allocation7 + $0x150] sm:$0xff]  ;;  %v1288_v62 = vld [vmem:[#allocation7 + $0x138] sm:$0xff] }
 0x236   :  { %v1277_v63 = vld [vmem:[#allocation7 + $0xe0] sm:$0xff]  ;;  %v1287_v0 = vld [vmem:[#allocation7 + $0x130] sm:$0xff] }
 0x237   :  { %v862_v6 = vmul.f32 %v853_v2, %v853_v2  ;;  %v1037_v7 = vmul.f32 0.010204081, %v1036_v3  ;;  %v861_v8 = vmul.f32 0.010204081, %v860_v4  ;;  %v1047_v9 = vadd.f32 %v1046_v5, %v1045_v1  ;;  %v1274_v1 = vld [vmem:[#allocation7 + $0xc8] sm:$0xff]  ;;  %v1273_v3 = vld [vmem:[#allocation7 + $0xc0] sm:$0xff] }
 0x238   :  { %v1283_v4 = vld [vmem:[#allocation7 + $0x110] sm:$0xff]  ;;  %v1270_v5 = vld [vmem:[#allocation7 + $0xa8] sm:$0xff] }
 0x239   :  { %v1049_v10 = vmul.f32 %v1037_v7, %v1037_v7  ;;  %v863_v11 = vsub.f32 %v861_v8, %v862_v6  ;;  %v1048_v12 = vmul.f32 0.010204081, %v1047_v9  ;;  %v1280_v6 = vld [vmem:[#allocation7 + $0xf8] sm:$0xff]  ;;  %v1279_v8 = vld [vmem:[#allocation7 + $0xf0] sm:$0xff]  ;;  %v1266_v9 = vld [vmem:[#allocation7 + $0x88] sm:$0xff] }
 0x23b   :  { %v865_v13 = vadd.f32 1e-05, %v863_v11  ;;  %v1050_v14 = vsub.f32 %v1048_v12, %v1049_v10  ;;  %v1276_v10 = vld [vmem:[#allocation7 + $0xd8] sm:$0xff]  ;;  %v1265_v11 = vld [vmem:[#allocation7 + $0x80] sm:$0xff]  ;;  %v1275_v12 = vld [vmem:[#allocation7 + $0xd0] sm:$0xff] }
 0x23d   :  { %2253 = vrsqrt.f32 %v865_v13  ;;  %v1051_v15 = vadd.f32 1e-05, %v1050_v14  ;;  %v1262_v13 = vld [vmem:[#allocation7 + $0x68] sm:$0xff]  ;;  %v1272_v14 = vld [vmem:[#allocation7 + $0xb8] sm:$0xff] }
 0x23f   :  { %2255 = vrsqrt.f32 %v1051_v15  ;;  %v1261_v15 = vld [vmem:[#allocation7 + $0x60] sm:$0xff] }
 0x24a   :  { %v2254_v17 = vpop.eup %2253 }
 0x24b   :  { %v867_v18 = vmul.f32 %v2254_v17, %v864_v16  ;;  %v1258_v17 = vld [vmem:[#allocation7 + $0x48] sm:$0xff] }
 0x24c   :  { %v2256_v35 = vpop.eup %2255 }
 0x24d   :  { %2049 = vmatmul.mubr.msk.f32.vlgmr.msra.gmra.mxu1 %vm874_vm3, %v867_v18  ;;  %v1053_v21 = vmul.f32 %v2256_v35, %v864_v16  ;;  %v869_v22 = vmul.f32 %v867_v18, %v853_v2  ;;  %v1284_v2 = vld [vmem:[#allocation7 + $0x118] sm:$0xff]  ;;  %v1271_v16 = vld [vmem:[#allocation7 + $0xb0] sm:$0xff]  ;;  %v1257_v35 = vld [vmem:[#allocation7 + $0x40] sm:$0xff] }
 0x24e   :  { %2051 = vmatpush1.msk.msra.mxu1 %vm353_vm0, %v2581_v23  ;;  %1020 = vmatprep.mubr.f32.mxu1 %v2398_v25  ;;  %v1268_v18 = vld [vmem:[#allocation7 + $0x98] sm:$0xff] }
 0x24f   :  { %2055 = vmatmul.mubr.msk.f32.vlgmr.msra.gmra.mxu0 %vm874_vm3, %v1053_v21  ;;  %2056 = vmatprep.subr.msk.mxu1 %vm353_vm0, %v2585_v24  ;;  %v870_v29 = vsub.f32 %v868_v28, %v869_v22  ;;  %v1054_v30 = vmul.f32 %v1053_v21, %v1037_v7  ;;  %v1298_v24 = vld [vmem:[#allocation7 + $0x188] sm:$0xff]  ;;  %v1269_v7 = vld [vmem:[#allocation7 + $0xa0] sm:$0xff]  ;;  %v1264_v22 = vld [vmem:[#allocation7 + $0x78] sm:$0xff] }
 0x250   :  { %1400 = vmatpush1.msra.mxu0 %v1309_v26  ;;  %v1254_v21 = vld [vmem:[#allocation7 + $0x28] sm:$0xff]  ;;  %v1253_v26 = vld [vmem:[#allocation7 + $0x20] sm:$0xff] }
 0x251   :  { %2052 = vmatmul.mubr.msk.f32.vlgmr.msra.gmra.mxu1 %vm874_vm3, %v870_v29  ;;  %1401 = vmatprep.subr.mxu0 %v1306_v27  ;;  %v1055_v36 = vsub.f32 %v868_v28, %v1054_v30  ;;  %v1267_v28 = vld [vmem:[#allocation7 + $0x90] sm:$0xff]  ;;  %v1250_v29 = vld [vmem:[#allocation7 + $0x8] sm:$0xff]  ;;  %v1260_v30 = vld [vmem:[#allocation7 + $0x58] sm:$0xff] }
 0x252   :  { %2057 = vmatpush1.msk.msra.mxu1 %vm353_vm0, %v2581_v23  ;;  %1197 = vmatprep.mubr.f32.mxu1 %v2398_v25  ;;  %v1293_v23 = vld [vmem:[#allocation7 + $0x160] sm:$0xff]  ;;  %v1263_v27 = vld [vmem:[#allocation7 + $0x70] sm:$0xff] }
 0x253   :  { %1470 = vmatprep.subr.mxu1 %v1312_v31  ;;  %1402 = vmatpush1.msra.mxu0 %v1305_v32  ;;  %v1249_v31 = vld [vmem:[#allocation7] sm:$0xff]  ;;  %v1259_v32 = vld [vmem:[#allocation7 + $0x50] sm:$0xff] }
 0x254   :  { %1403 = vmatprep.subr.mxu0 %v1302_v33  ;;  %v1374_v33 = vld [vmem:[#allocation7 + $0x3e8] sm:$0xff] }
 0x255   :  { %2058 = vmatmul.mubr.msk.f32.vlgmr.msra.gmra.mxu1 %vm874_vm3, %v1055_v36  ;;  %1404 = vmatpush1.msra.mxu0 %v1301_v34  ;;  %v1256_v34 = vld [vmem:[#allocation7 + $0x38] sm:$0xff]  ;;  %v1373_v36 = vld [vmem:[#allocation7 + $0x3e0] sm:$0xff] }
 0x256   :  { %1471 = vmatpush1.msra.mxu1 %v1311_v37  ;;  %1405 = vmatprep.subr.mxu0 %v1298_v24  ;;  %v1255_v37 = vld [vmem:[#allocation7 + $0x30] sm:$0xff]  ;;  %v1370_v24 = vld [vmem:[#allocation7 + $0x3c8] sm:$0xff] }
 0x257   :  { %1472 = vmatprep.subr.mxu1 %v1308_v38  ;;  %1406 = vmatpush1.msra.mxu0 %v1297_v39  ;;  %v1252_v38 = vld [vmem:[#allocation7 + $0x18] sm:$0xff]  ;;  %v1369_v39 = vld [vmem:[#allocation7 + $0x3c0] sm:$0xff] }
 0x258   :  { %1473 = vmatpush1.msra.mxu1 %v1307_v40  ;;  %1407 = vmatprep.subr.mxu0 %v1294_v41  ;;  %v1251_v40 = vld [vmem:[#allocation7 + $0x10] sm:$0xff]  ;;  %v1366_v41 = vld [vmem:[#allocation7 + $0x3a8] sm:$0xff] }
 0x259   :  { %1474 = vmatprep.subr.mxu1 %v1304_v42  ;;  %1408 = vmatpush1.msra.mxu0 %v1293_v23  ;;  %v1376_v42 = vld [vmem:[#allocation7 + $0x3f8] sm:$0xff]  ;;  %v1365_v23 = vld [vmem:[#allocation7 + $0x3a0] sm:$0xff] }
 0x25a   :  { %1475 = vmatpush1.msra.mxu1 %v1303_v43  ;;  %1409 = vmatprep.subr.mxu0 %v1290_v44  ;;  %v1375_v43 = vld [vmem:[#allocation7 + $0x3f0] sm:$0xff]  ;;  %v1362_v44 = vld [vmem:[#allocation7 + $0x388] sm:$0xff] }
 0x25b   :  { %1476 = vmatprep.subr.mxu1 %v1300_v48  ;;  %1410 = vmatpush1.msra.mxu0 %v1289_v51  ;;  %v1372_v48 = vld [vmem:[#allocation7 + $0x3d8] sm:$0xff]  ;;  %v1361_v51 = vld [vmem:[#allocation7 + $0x380] sm:$0xff] }
 0x25c   :  { %1477 = vmatpush1.msra.mxu1 %v1299_v52  ;;  %1411 = vmatprep.subr.mxu0 %v1286_v53  ;;  %v1371_v52 = vld [vmem:[#allocation7 + $0x3d0] sm:$0xff]  ;;  %v1358_v53 = vld [vmem:[#allocation7 + $0x368] sm:$0xff] }
 0x25d   :  { %1478 = vmatprep.subr.mxu1 %v1296_v54  ;;  %1412 = vmatpush1.msra.mxu0 %v1285_v55  ;;  %v1368_v54 = vld [vmem:[#allocation7 + $0x3b8] sm:$0xff]  ;;  %v1357_v55 = vld [vmem:[#allocation7 + $0x360] sm:$0xff] }
 0x25e   :  { %1479 = vmatpush1.msra.mxu1 %v1295_v56  ;;  %1413 = vmatprep.subr.mxu0 %v1282_v57  ;;  %v1367_v56 = vld [vmem:[#allocation7 + $0x3b0] sm:$0xff]  ;;  %v1354_v57 = vld [vmem:[#allocation7 + $0x348] sm:$0xff] }
 0x25f   :  { %1480 = vmatprep.subr.mxu1 %v1292_v58  ;;  %1414 = vmatpush1.msra.mxu0 %v1281_v59  ;;  %v1364_v58 = vld [vmem:[#allocation7 + $0x398] sm:$0xff]  ;;  %v1353_v59 = vld [vmem:[#allocation7 + $0x340] sm:$0xff] }
 0x260   :  { %1481 = vmatpush1.msra.mxu1 %v1291_v60  ;;  %1415 = vmatprep.subr.mxu0 %v1278_v61  ;;  %v1363_v60 = vld [vmem:[#allocation7 + $0x390] sm:$0xff]  ;;  %v1350_v61 = vld [vmem:[#allocation7 + $0x328] sm:$0xff] }
 0x261   :  { %1482 = vmatprep.subr.mxu1 %v1288_v62  ;;  %1416 = vmatpush1.msra.mxu0 %v1277_v63  ;;  %v1360_v62 = vld [vmem:[#allocation7 + $0x378] sm:$0xff]  ;;  %v1349_v63 = vld [vmem:[#allocation7 + $0x320] sm:$0xff] }
 0x262   :  { %1483 = vmatpush1.msra.mxu1 %v1287_v0  ;;  %1417 = vmatprep.subr.mxu0 %v1274_v1  ;;  %v1359_v0 = vld [vmem:[#allocation7 + $0x370] sm:$0xff]  ;;  %v1346_v1 = vld [vmem:[#allocation7 + $0x308] sm:$0xff] }
 0x263   :  { %1484 = vmatprep.subr.mxu1 %v1284_v2  ;;  %1418 = vmatpush1.msra.mxu0 %v1273_v3  ;;  %v1356_v2 = vld [vmem:[#allocation7 + $0x358] sm:$0xff]  ;;  %v1355_v3 = vld [vmem:[#allocation7 + $0x350] sm:$0xff] }
 0x264   :  { %1485 = vmatpush1.msra.mxu1 %v1283_v4  ;;  %1419 = vmatprep.subr.mxu0 %v1270_v5  ;;  %v1352_v4 = vld [vmem:[#allocation7 + $0x338] sm:$0xff]  ;;  %v1351_v5 = vld [vmem:[#allocation7 + $0x330] sm:$0xff] }
 0x265   :  { %1486 = vmatprep.subr.mxu1 %v1280_v6  ;;  %1420 = vmatpush1.msra.mxu0 %v1269_v7  ;;  %v1348_v6 = vld [vmem:[#allocation7 + $0x318] sm:$0xff]  ;;  %v1345_v7 = vld [vmem:[#allocation7 + $0x300] sm:$0xff] }
 0x266   :  { %1487 = vmatpush1.msra.mxu1 %v1279_v8  ;;  %1421 = vmatprep.subr.mxu0 %v1266_v9  ;;  %v1347_v8 = vld [vmem:[#allocation7 + $0x310] sm:$0xff]  ;;  %v1342_v9 = vld [vmem:[#allocation7 + $0x2e8] sm:$0xff] }
 0x267   :  { %1488 = vmatprep.subr.mxu1 %v1276_v10  ;;  %1422 = vmatpush1.msra.mxu0 %v1265_v11  ;;  %v1344_v10 = vld [vmem:[#allocation7 + $0x2f8] sm:$0xff]  ;;  %v1341_v11 = vld [vmem:[#allocation7 + $0x2e0] sm:$0xff] }
 0x268   :  { %1489 = vmatpush1.msra.mxu1 %v1275_v12  ;;  %1423 = vmatprep.subr.mxu0 %v1262_v13  ;;  %v1343_v12 = vld [vmem:[#allocation7 + $0x2f0] sm:$0xff]  ;;  %v1338_v13 = vld [vmem:[#allocation7 + $0x2c8] sm:$0xff] }
 0x269   :  { %1490 = vmatprep.subr.mxu1 %v1272_v14  ;;  %1424 = vmatpush1.msra.mxu0 %v1261_v15  ;;  %v1340_v14 = vld [vmem:[#allocation7 + $0x2d8] sm:$0xff]  ;;  %v1337_v15 = vld [vmem:[#allocation7 + $0x2c0] sm:$0xff] }
 0x26a   :  { %1491 = vmatpush1.msra.mxu1 %v1271_v16  ;;  %1425 = vmatprep.subr.mxu0 %v1258_v17  ;;  %v1339_v16 = vld [vmem:[#allocation7 + $0x2d0] sm:$0xff]  ;;  %v1334_v17 = vld [vmem:[#allocation7 + $0x2a8] sm:$0xff] }
 0x26b   :  { %1492 = vmatprep.subr.mxu1 %v1268_v18  ;;  %1426 = vmatpush1.msra.mxu0 %v1257_v35  ;;  %v1336_v18 = vld [vmem:[#allocation7 + $0x2b8] sm:$0xff]  ;;  %v1333_v35 = vld [vmem:[#allocation7 + $0x2a0] sm:$0xff] }
 0x26c   :  { %1493 = vmatpush1.msra.mxu1 %v1267_v28  ;;  %1427 = vmatprep.subr.mxu0 %v1254_v21  ;;  %v1335_v28 = vld [vmem:[#allocation7 + $0x2b0] sm:$0xff]  ;;  %v1330_v21 = vld [vmem:[#allocation7 + $0x288] sm:$0xff] }
 0x26d   :  { %1494 = vmatprep.subr.mxu1 %v1264_v22  ;;  %1428 = vmatpush1.msra.mxu0 %v1253_v26  ;;  %v1332_v22 = vld [vmem:[#allocation7 + $0x298] sm:$0xff]  ;;  %v1329_v26 = vld [vmem:[#allocation7 + $0x280] sm:$0xff] }
 0x26e   :  { %1495 = vmatpush1.msra.mxu1 %v1263_v27  ;;  %1429 = vmatprep.subr.mxu0 %v1250_v29  ;;  %v1331_v27 = vld [vmem:[#allocation7 + $0x290] sm:$0xff]  ;;  %v1326_v29 = vld [vmem:[#allocation7 + $0x268] sm:$0xff] }
 0x26f   :  { %1496 = vmatprep.subr.mxu1 %v1260_v30  ;;  %1430 = vmatpush1.msra.mxu0 %v1249_v31  ;;  %v1328_v30 = vld [vmem:[#allocation7 + $0x278] sm:$0xff]  ;;  %v1325_v31 = vld [vmem:[#allocation7 + $0x260] sm:$0xff] }
 0x270   :  { %1497 = vmatpush1.msra.mxu1 %v1259_v32  ;;  %1431 = vmatprep.subr.mxu0 %v1374_v33  ;;  %v1327_v32 = vld [vmem:[#allocation7 + $0x270] sm:$0xff]  ;;  %v1322_v33 = vld [vmem:[#allocation7 + $0x248] sm:$0xff] }
 0x271   :  { %1498 = vmatprep.subr.mxu1 %v1256_v34  ;;  %1432 = vmatpush2.msra.mxu0 %v1373_v36  ;;  %v1324_v34 = vld [vmem:[#allocation7 + $0x258] sm:$0xff]  ;;  %v1321_v36 = vld [vmem:[#allocation7 + $0x240] sm:$0xff] }
 0x272   :  { %1499 = vmatpush1.msra.mxu1 %v1255_v37  ;;  %1433 = vmatprep.subr.mxu0 %v1370_v24  ;;  %v1323_v37 = vld [vmem:[#allocation7 + $0x250] sm:$0xff]  ;;  %v1318_v24 = vld [vmem:[#allocation7 + $0x228] sm:$0xff] }
 0x273   :  { %1500 = vmatprep.subr.mxu1 %v1252_v38  ;;  %1434 = vmatpush2.msra.mxu0 %v1369_v39  ;;  %v1320_v38 = vld [vmem:[#allocation7 + $0x238] sm:$0xff]  ;;  %v1317_v39 = vld [vmem:[#allocation7 + $0x220] sm:$0xff] }
 0x274   :  { %1501 = vmatpush1.msra.mxu1 %v1251_v40  ;;  %1435 = vmatprep.subr.mxu0 %v1366_v41  ;;  %v1319_v40 = vld [vmem:[#allocation7 + $0x230] sm:$0xff]  ;;  %v1314_v41 = vld [vmem:[#allocation7 + $0x208] sm:$0xff] }
 0x275   :  { %1502 = vmatprep.subr.mxu1 %v1376_v42  ;;  %1436 = vmatpush2.msra.mxu0 %v1365_v23  ;;  %v1316_v42 = vld [vmem:[#allocation7 + $0x218] sm:$0xff]  ;;  %v1313_v23 = vld [vmem:[#allocation7 + $0x200] sm:$0xff] }
 0x276   :  { %1503 = vmatpush2.msra.mxu1 %v1375_v43  ;;  %1437 = vmatprep.subr.mxu0 %v1362_v44  ;;  %v1315_v43 = vld [vmem:[#allocation7 + $0x210] sm:$0xff] }
 0x277   :  { %1504 = vmatprep.subr.mxu1 %v1372_v48  ;;  %1438 = vmatpush2.msra.mxu0 %v1361_v51 }
 0x278   :  { %1505 = vmatpush2.msra.mxu1 %v1371_v52  ;;  %1439 = vmatprep.subr.mxu0 %v1358_v53 }
 0x279   :  { %1506 = vmatprep.subr.mxu1 %v1368_v54  ;;  %1440 = vmatpush2.msra.mxu0 %v1357_v55 }
 0x27a   :  { %1507 = vmatpush2.msra.mxu1 %v1367_v56  ;;  %1441 = vmatprep.subr.mxu0 %v1354_v57 }
 0x27b   :  { %1508 = vmatprep.subr.mxu1 %v1364_v58  ;;  %1442 = vmatpush2.msra.mxu0 %v1353_v59 }
 0x27c   :  { %1509 = vmatpush2.msra.mxu1 %v1363_v60  ;;  %1443 = vmatprep.subr.mxu0 %v1350_v61 }
 0x27d   :  { %1510 = vmatprep.subr.mxu1 %v1360_v62  ;;  %1444 = vmatpush2.msra.mxu0 %v1349_v63 }
 0x27e   :  { %1511 = vmatpush2.msra.mxu1 %v1359_v0  ;;  %1445 = vmatprep.subr.mxu0 %v1346_v1 }
 0x27f   :  { %1512 = vmatprep.subr.mxu1 %v1356_v2  ;;  %1446 = vmatpush2.msra.mxu0 %v1345_v7 }
 0x280   :  { %1513 = vmatpush2.msra.mxu1 %v1355_v3  ;;  %1447 = vmatprep.subr.mxu0 %v1342_v9  ;;  %v1560_v9 = vld [vmem:[%s2782_s9 + $0x78] sm:$0xff] }
 0x281   :  { %1514 = vmatprep.subr.mxu1 %v1352_v4  ;;  %1448 = vmatpush2.msra.mxu0 %v1341_v11  ;;  %v1556_v11 = vld [vmem:[%s2782_s9 + $0x58] sm:$0xff] }
 0x282   :  { %1515 = vmatpush2.msra.mxu1 %v1351_v5  ;;  %1449 = vmatprep.subr.mxu0 %v1338_v13  ;;  %v1554_v13 = vld [vmem:[%s2782_s9 + $0x48] sm:$0xff] }
 0x283   :  { %1516 = vmatprep.subr.mxu1 %v1348_v6  ;;  %1450 = vmatpush2.msra.mxu0 %v1337_v15  ;;  %v1552_v15 = vld [vmem:[%s2782_s9 + $0x38] sm:$0xff] }
 0x284   :  { %1517 = vmatpush2.msra.mxu1 %v1347_v8  ;;  %1451 = vmatprep.subr.mxu0 %v1334_v17  ;;  %v1550_v17 = vld [vmem:[%s2782_s9 + $0x28] sm:$0xff] }
 0x285   :  { %1518 = vmatprep.subr.mxu1 %v1344_v10  ;;  %1452 = vmatpush2.msra.mxu0 %v1333_v35  ;;  %v1559_v10 = vld [vmem:[%s2782_s9 + $0x70] sm:$0xff]  ;;  %v1548_v35 = vld [vmem:[%s2782_s9 + $0x18] sm:$0xff] }
 0x286   :  { %1519 = vmatpush2.msra.mxu1 %v1343_v12  ;;  %1453 = vmatprep.subr.mxu0 %v1330_v21  ;;  %v1555_v12 = vld [vmem:[%s2782_s9 + $0x50] sm:$0xff]  ;;  %v1546_v21 = vld [vmem:[%s2782_s9 + $0x8] sm:$0xff] }
 0x287   :  { %1520 = vmatprep.subr.mxu1 %v1340_v14  ;;  %1454 = vmatpush2.msra.mxu0 %v1329_v26  ;;  %v1553_v14 = vld [vmem:[%s2782_s9 + $0x40] sm:$0xff]  ;;  %v1642_v26 = vld [vmem:[%s2784_s11 + $0x18] sm:$0xff] }
 0x288   :  { %1521 = vmatpush2.msra.mxu1 %v1339_v16  ;;  %1455 = vmatprep.subr.mxu0 %v1326_v29  ;;  %v1551_v16 = vld [vmem:[%s2782_s9 + $0x30] sm:$0xff] }
 0x289   :  { %1522 = vmatprep.subr.mxu1 %v1336_v18  ;;  %1456 = vmatpush2.msra.mxu0 %v1325_v31  ;;  %v1549_v18 = vld [vmem:[%s2782_s9 + $0x20] sm:$0xff] }
 0x28a   :  { %1523 = vmatpush2.msra.mxu1 %v1335_v28  ;;  %1457 = vmatprep.subr.mxu0 %v1322_v33  ;;  %v1547_v28 = vld [vmem:[%s2782_s9 + $0x10] sm:$0xff] }
 0x28b   :  { %1524 = vmatprep.subr.mxu1 %v1332_v22  ;;  %1458 = vmatpush2.msra.mxu0 %v1321_v36  ;;  %v1545_v22 = vld [vmem:[%s2782_s9] sm:$0xff] }
 0x28c   :  { %1525 = vmatpush2.msra.mxu1 %v1331_v27  ;;  %1459 = vmatprep.subr.mxu0 %v1318_v24  ;;  %v1377_v27 = vld [vmem:[%s2781_s8] sm:$0xf]  ;;  %s2321_s8 = scalar_lea.vmem %s2009_s1, 32 }
 0x28d   :  { %1526 = vmatprep.subr.mxu1 %v1328_v30  ;;  %1460 = vmatpush2.msra.mxu0 %v1317_v39  ;;  %v1382_v29 = vrot.slane %v1377_v27, %v2549_v46  ;;  %v1390_v30 = vrot.slane %v1377_v27, %v318_v47  ;;  %v1386_v31 = vrot.slane %v1377_v27, %v314_v49  ;;  %v1641_v47 = vld [vmem:[%s2784_s11 + $0x10] sm:$0xff]  ;;  %v1639_v49 = vld [vmem:[%s2784_s11] sm:$0xff]  ;;  %p2322_p1 = scmp.ne.s32.totalorder %s2009_s1, %s2321_s8  ;;  %p2327_p3 = scmp.lt.s32.totalorder %s2321_s8, %s2321_s8 }
 0x28e   :  { %1527 = vmatpush2.msra.mxu1 %v1327_v32  ;;  %1461 = vmatprep.subr.mxu0 %v1314_v41  ;;  %v1394_v32 = vrot.slane %v1377_v27, %v322_v50  ;;  %v2059_v50 = vld [vmem:[%s2783_s10] ss:$0 sm:$0xff] }
 0x28f   :  { %1528 = vmatprep.subr.mxu1 %v1324_v34  ;;  %1462 = vmatpush2.msra.mxu0 %v1313_v23  ;;  %p2328_p4 = por %p2327_p3, %p2326_p2 }
 0x290   :  { %1529 = vmatpush2.msra.mxu1 %v1323_v37  ;;  %2170 = vmatprep.subr.mxu0 %v2398_v25 }
 0x291   :  { %1530 = vmatprep.subr.mxu1 %v1320_v38  ;;  %p2329_p5 = pnand %p2328_p4, %p2322_p1 }
 0x292   :  { %1531 = vmatpush2.msra.mxu1 %v1319_v40 }
 0x293   :  { %1532 = vmatprep.subr.mxu1 %v1316_v42 }
 0x294   :  { %1533 = vmatpush2.msra.mxu1 %v1315_v43 }
 0x295   :  { %2205 = vmatprep.subr.mxu1 %v2398_v25 }
 0x30d   :  { %v948_v44 = vpop.f32.mrf.mxu1 }
 0x30e   :  { %v1212_v58 = vrot.slane %v948_v44, %v2549_v46 }
 0x30f   :  { %v950_v48 = vpop.f32.mrf.mxu1  ;;  %v1125_v51 = vpop.f32.mrf.mxu0 }
 0x310   :  { %v1220_v55 = vrot.slane %v1125_v51, %v2549_v46  ;;  %v1216_v57 = vrot.slane %v950_v48, %v2549_v46 }
 0x311   :  { %v1022_v52 = vpop.f32.mrf.mxu1  ;;  %v1127_v53 = vpop.f32.mrf.mxu0 }
 0x312   :  { %v1224_v54 = vrot.slane %v1127_v53, %v2549_v46  ;;  %v1225_v62 = vsel %vm1206_vm4, %v1212_v58, %v1220_v55  ;;  %v1232_v63 = vrot.slane %v1022_v52, %v2549_v46  ;;  %v2060_v52 = vld [vmem:[%s2785_s12] ss:$0 sm:$0xff] }
 0x313   :  { %v1024_v56 = vpop.f32.mrf.mxu1  ;;  %v1227_v5 = vmul.f32 %v1225_v62, %v2568_v19  ;;  %v1558_v19 = vld [vmem:[%s2782_s9 + $0x68] sm:$0xff] }
 0x314   :  { %v1226_v60 = vsel %vm1206_vm4, %v1216_v57, %v1224_v54  ;;  %v1236_v1 = vrot.slane %v1024_v56, %v2549_v46  ;;  %v1743_v62 = vld [vmem:[%s2787_s14 + $0x8] sm:$0x3] }
 0x315   :  { %v1199_v59 = vpop.f32.mrf.mxu1  ;;  %v1228_v4 = vmul.f32 %v1226_v60, %v2570_v20  ;;  %v1557_v20 = vld [vmem:[%s2782_s9 + $0x60] sm:$0xff] }
 0x316   :  { %v1240_v61 = vrot.slane %v1199_v59, %v2549_v46 }
 0x317   :  { %v1201_v0 = vpop.f32.mrf.mxu1 }
 0x318   :  { %v1244_v2 = vrot.slane %v1201_v0, %v2549_v46  ;;  %v1245_v3 = vsel %vm1206_vm4, %v1232_v63, %v1240_v61  ;;  %v1742_v63 = vld [vmem:[%s2787_s14] sm:$0xff] }
 0x319   :  { %v1247_v8 = vadd.f32 %v1245_v3, %v1227_v5  ;;  %v1740_v5 = vld [vmem:[%s2786_s13] sm:$0xff] }
 0x31a   :  { %v1246_v6 = vsel %vm1206_vm4, %v1236_v1, %v1244_v2 }
 0x31b   :  { %v1248_v7 = vadd.f32 %v1246_v6, %v1228_v4  ;;  %v1741_v4 = vld [vmem:[%s2786_s13 + $0x8] sm:$0x3] }
 0x31c   :  { %v1908_v6 = vld [vmem:[%s2789_s16 + $0x8] sm:$0xff] }
 0x31d   :  { %1463 = vmatprep.mubr.f32.mxu0 %v1248_v7  ;;  %1534 = vmatprep.mubr.f32.mxu1 %v1248_v7  ;;  %v1907_v7 = vld [vmem:[%s2789_s16] sm:$0xff] }
 0x31e   :  { %1464 = vmatmul.mubr.f32.vlgmr.msra.gmra.mxu0 %v1247_v8  ;;  %1535 = vmatmul.mubr.f32.vlgmr.msra.gmra.mxu1 %v1247_v8 }
 0x31f   :  { %2171 = vmatpush3.msra.mxu0 %v1560_v9  ;;  %2202 = vmatprep.mubr.msk.f32.mxu0 %vm2399_vm5, %v2398_v25 }
 0x320   :  { %2172 = vmatprep.subr.mxu0 %v2398_v25  ;;  %2213 = vmatprep.mubr.msk.f32.mxu1 %vm2399_vm5, %v2398_v25 }
 0x321   :  { %2173 = vmatpush3.msra.mxu0 %v1559_v10  ;;  %2206 = vmatpush3.msra.mxu1 %v1642_v26 }
 0x322   :  { %2174 = vmatprep.subr.mxu0 %v2398_v25  ;;  %2207 = vmatprep.subr.mxu1 %v2398_v25 }
 0x323   :  { %2175 = vmatpush3.msra.mxu0 %v1558_v19  ;;  %2208 = vmatpush3.msra.mxu1 %v1641_v47  ;;  %v2066_v19 = vld [vmem:[%s2788_s15] ss:$0 sm:$0xff] }
 0x324   :  { %2176 = vmatprep.subr.mxu0 %v2398_v25  ;;  %2209 = vmatprep.subr.mxu1 %v2398_v25 }
 0x325   :  { %2177 = vmatpush3.msra.mxu0 %v1557_v20  ;;  %2210 = vmatpush3.msra.mxu1 %v1640_v45 }
 0x326   :  { %2178 = vmatprep.subr.mxu0 %v2398_v25  ;;  %2211 = vmatprep.subr.mxu1 %v2398_v25 }
 0x327   :  { %2179 = vmatpush3.msra.mxu0 %v1556_v11  ;;  %2212 = vmatpush3.msra.mxu1 %v1639_v49 }
 0x328   :  { %2180 = vmatprep.subr.mxu0 %v2398_v25  ;;  %2216 = vmatprep.subr.mxu1 %v2398_v25 }
 0x329   :  { %2181 = vmatpush3.msra.mxu0 %v1555_v12 }
 0x32a   :  { %2182 = vmatprep.subr.mxu0 %v2398_v25 }
 0x32b   :  { %2183 = vmatpush3.msra.mxu0 %v1554_v13 }
 0x32c   :  { %2184 = vmatprep.subr.mxu0 %v2398_v25 }
 0x32d   :  { %2185 = vmatpush3.msra.mxu0 %v1553_v14 }
 0x32e   :  { %2186 = vmatprep.subr.mxu0 %v2398_v25 }
 0x32f   :  { %2187 = vmatpush3.msra.mxu0 %v1552_v15 }
 0x330   :  { %2188 = vmatprep.subr.mxu0 %v2398_v25 }
 0x331   :  { %2189 = vmatpush3.msra.mxu0 %v1551_v16 }
 0x332   :  { %2190 = vmatprep.subr.mxu0 %v2398_v25 }
 0x333   :  { %2191 = vmatpush3.msra.mxu0 %v1550_v17 }
 0x334   :  { %2192 = vmatprep.subr.mxu0 %v2398_v25 }
 0x335   :  { %2193 = vmatpush3.msra.mxu0 %v1549_v18 }
 0x336   :  { %2194 = vmatprep.subr.mxu0 %v2398_v25 }
 0x337   :  { %2195 = vmatpush3.msra.mxu0 %v1548_v35 }
 0x338   :  { %2196 = vmatprep.subr.mxu0 %v2398_v25 }
 0x339   :  { %2197 = vmatpush3.msra.mxu0 %v1547_v28 }
 0x33a   :  { %2198 = vmatprep.subr.mxu0 %v2398_v25 }
 0x33b   :  { %2199 = vmatpush3.msra.mxu0 %v1546_v21 }
 0x33c   :  { %2200 = vmatprep.subr.mxu0 %v2398_v25 }
 0x33d   :  { %2201 = vmatpush3.msra.mxu0 %v1545_v22 }
 0x3de   :  { %v1465_v33 = vpop.f32.mrf.mxu0  ;;  %v1536_v34 = vpop.f32.mrf.mxu1 }
 0x3df   :  { %v1466_v24 = vadd.f32 %v1465_v33, %v1382_v29  ;;  %v1537_v38 = vadd.f32 %v1536_v34, %v1390_v30 }
 0x3e0   :  { %v1467_v36 = vpop.f32.mrf.mxu0  ;;  %v1538_v37 = vpop.f32.mrf.mxu1 }
 0x3e1   :  { %v1468_v39 = vadd.f32 %v1467_v36, %v1386_v31  ;;  %v1539_v40 = vadd.f32 %v1538_v37, %v1394_v32 }
 0x3e3   :  { %v1541_v41 = vmax.f32 %v1466_v24, %v1468_v39  ;;  %v1542_v42 = vmax.f32 %v1537_v38, %v1539_v40 }
 0x3e5   :  { %v1543_v46 = vmax.f32 %v1541_v41, %v1542_v42 }
 0x3e7   :  { %v1544_v23 = vmax.f32 %v1543_v46, 0.0 }
 0x3e9   :  { %2203 = vmatmul.mubr.f32.vlgmr.msra.gmra.mxu0 %v1544_v23 }
 0x4a9   :  { %v1634_v43 = vpop.f32.mrf.mxu0 }
 0x4aa   :  { %v1635_v44 = vadd.f32 %v2059_v50, %v1634_v43 }
 0x4ab   :  { %v2204_v48 = vpop.f32.mrf.mxu0 }
 0x4ac   :  { %v1638_v51 = vmax.f32 %v1635_v44, 0.0 }
 0x4ae   :  { %2214 = vmatmul.mubr.msk.f32.vlgmr.msra.gmra.mxu1 %vm1650_vm6, %v1638_v51 }
 0x4af   :  { %2220 = vmatprep.mubr.msk.f32.mxu1 %vm2399_vm5, %v2398_v25  ;;  %2217 = vmatpush3.msk.msra.mxu1 %vm1749_vm10, %v1743_v62 }
 0x4b0   :  { %2218 = vmatprep.subr.mxu1 %v2398_v25 }
 0x4b1   :  { %2219 = vmatpush3.msra.mxu1 %v1742_v63 }
 0x4b2   :  { %2223 = vmatprep.subr.mxu1 %v2398_v25 }
 0x56e   :  { %v1720_v53 = vpop.f32.mrf.mxu1 }
 0x56f   :  { %v1721_v54 = vadd.f32 %v2060_v52, %v1720_v53 }
 0x570   :  { %v2215_v55 = vpop.f32.mrf.mxu1 }
 0x571   :  { %v1729_v56 = vsel %vm1728_vm7, %v1721_v54, -inf  ;;  %1725 = vst.msk [vmem:[#allocation9] sm:$0x3] %vm1724_vm8, %v1721_v54 }
 0x572   :  { %1727 = vst.msk [vmem:[#allocation11 - $0x2] sm:$0xc] %vm1726_vm9, %v1721_v54  ;;  %1730 = vmax.xlane.f32.xlu0 %v1729_v56 }
 0x5fb   :  { %v1731_v57 = vpop.xlane.xlu0 %1730 }
 0x5fc   :  { %v1732_v58 = vsub.f32 %v1721_v54, %v1731_v57 }
 0x5fe   :  { %v1733_v59 = vmul.f32 1.442695, %v1732_v58 }
 0x600   :  { %2257 = vpow2.f32 %v1733_v59 }
 0x60d   :  { %v2258_v60 = vpop.eup %2257 }
 0x60e   :  { %v1735_v61 = vsel %vm1728_vm7, %v2258_v60, 0.0 }
 0x60f   :  { %1736 = vadd.xlane.f32.xlu0 %v1735_v61 }
 0x698   :  { %v1737_v0 = vpop.xlane.xlu0 %1736 }
 0x699   :  { %2259 = vrcp.f32 %v1737_v0 }
 0x6a6   :  { %v2260_v1 = vpop.eup %2259 }
 0x6a7   :  { %v1739_v2 = vmul.f32 %v2260_v1, %v2258_v60 }
 0x6a9   :  { %v1745_v3 = vrot.slane %v1739_v2, 2 }
 0x6ab   :  { %2221 = vmatmul.mubr.msk.f32.vlgmr.msra.gmra.mxu1 %vm1746_vm11, %v1745_v3 }
 0x6ac   :  { %2224 = vmatpush3.msk.msra.mxu1 %vm1749_vm10, %v1741_v4  ;;  %2227 = vmatprep.mubr.msk.f32.mxu1 %vm2399_vm5, %v2398_v25 }
 0x6ad   :  { %2225 = vmatprep.subr.mxu1 %v2398_v25 }
 0x6ae   :  { %2226 = vmatpush3.msra.mxu1 %v1740_v5 }
 0x6af   :  { %2228 = vmatmul.mubr.msk.f32.vlgmr.msra.gmra.mxu1 %vm1746_vm11, %v1739_v2  ;;  %2230 = vmatprep.subr.mxu1 %v2398_v25 }
 0x6b0   :  { %2234 = vmatprep.mubr.msk.f32.mxu1 %vm2399_vm5, %v2398_v25  ;;  %2231 = vmatpush3.msra.mxu1 %v1908_v6 }
 0x6b1   :  { %2232 = vmatprep.subr.mxu1 %v2398_v25 }
 0x6b2   :  { %2233 = vmatpush3.msra.mxu1 %v1907_v7 }
 0x76b   :  { %v1819_v8 = vpop.f32.mrf.mxu1 }
 0x76d   :  { %v2222_v9 = vpop.f32.mrf.mxu1 }
 0x76f   :  { %v1894_v10 = vpop.f32.mrf.mxu1 }
 0x770   :  { %v1895_v20 = vadd.f32 %v1894_v10, %v1819_v8 }
 0x771   :  { %v2229_v11 = vpop.f32.mrf.mxu1 }
 0x772   :  { %v1905_v12 = vadd.f32 %v2066_v19, %v1895_v20 }
 0x774   :  { %v1906_v13 = vmax.f32 %v1905_v12, 0.0 }
 0x776   :  { %2235 = vmatmul.mubr.msk.f32.vlgmr.msra.gmra.mxu1 %vm1916_vm12, %v1906_v13 }
 0x777   :  { %2332 = shalt.err (!%p2329_p5)
}
 0x778   :  { %2011 = dma.vmem_to_hbm [thread:$0]  %s2009_s1, 32, %s2792_s19, [#allocation10]  }
 0x779   :  { %s2401_s15 = smov [#allocation11]  }
 0x77a   :  { %s2018_s23 = sshll.u32 %s2401_s15, 4  ;;  %s2019_s23 = int_to_ptr.vmem [resolvable:$true] %s2018_s23 }
 0x77b   :  { %s2341_s22 = scalar_lea.vmem %s2019_s23, 32  ;;  %p2346_p7 = scmp.lt.s32.totalorder %s2019_s23, %s2019_s23 }
 0x77c   :  { %p2342_p6 = scmp.ne.s32.totalorder %s2019_s23, %s2341_s22  ;;  %p2347_p8 = scmp.lt.s32.totalorder %s2341_s22, %s2341_s22 }
 0x77e   :  { %p2348_p9 = por %p2347_p8, %p2346_p7 }
 0x780   :  { %p2349_p10 = pnand %p2348_p9, %p2342_p6 }
 0x782   :  { %2352 = shalt.err (!%p2349_p10)
}
 0x783   :  { %2021 = dma.vmem_to_hbm [thread:$0]  %s2019_s23, 32, %s2793_s20, [#allocation10]   ;;  %v2067_v25 = vld [vmem:[%s2790_s17] ss:$0 sm:$0xff]  ;;  %vm1990_vm13 = vcmask 9216  }
 0x784   :  { %s2402_s25 = smov [#allocation8]  }
 0x785   :  { %s1998_s19 = sshll.u32 %s2402_s25, 4  ;;  %s1999_s19 = int_to_ptr.vmem [resolvable:$true] %s1998_s19 }
 0x786   :  { %s2361_s3 = scalar_lea.vmem %s1999_s19, 32  ;;  %p2366_p12 = scmp.lt.s32.totalorder %s1999_s19, %s1999_s19 }
 0x787   :  { %p2362_p11 = scmp.ne.s32.totalorder %s1999_s19, %s2361_s3  ;;  %p2367_p13 = scmp.lt.s32.totalorder %s2361_s3, %s2361_s3 }
 0x789   :  { %p2368_p0 = por %p2367_p13, %p2366_p12 }
 0x78b   :  { %p2369_p1 = pnand %p2368_p0, %p2362_p11 }
 0x836   :  { %v1986_v14 = vpop.f32.mrf.mxu1 }
 0x837   :  { %v1987_v15 = vadd.f32 %v2067_v25, %v1986_v14 }
 0x838   :  { %v2236_v16 = vpop.f32.mrf.mxu1 }
 0x839   :  { %1991 = vst.msk [vmem:[#allocation8] sm:$0x3] %vm1990_vm13, %v1987_v15 }
 0x83a   :  { %2372 = shalt.err (!%p2369_p1)
}
 0x83b   :  { %s2805_s11 = sld [smem:[#allocation21_spill]] }
 0x841   :  { %2001 = dma.vmem_to_hbm [thread:$0]  %s1999_s19, 32, %s2805_s11, [#allocation4]  }
 0x842   :  { %2385 = dma.done.wait [#allocation4], 32  }
 0x843   :  { %2386 = vsyncadd [#allocation4], 4294967264 }
 0x844   :  { %2387 = dma.done.wait [#allocation10], 64  }
 0x845   :  { %2388 = vsyncadd [#allocation10], 4294967232 }
 0x846   :  { %2031 = vsyncpa [#allocation3], 1 }
 0x847   :  { %2032 = vsyncpa [#allocation6], 1 }
 0x848   :  { %2033 = vsyncpa [#allocation4], 1 }
 0x849   :  { %2034 = vsyncpa [#allocation10], 1 }

</bundles_post_ra>
